<compile_context>
chip_gen: v6e
topology: v6e:2x2x1
jax: 0.10.0
libtpu: 0.0.40
codegen_flags: <defaults>
</compile_context>

<pallas_src>
import functools
import math

import jax
import jax.numpy as jnp
from jax import lax
from jax.experimental import pallas as pl
from jax.experimental.pallas import tpu as pltpu

EPS = 1e-6
KV_CHUNK = 512                      # KV chunk for the in-kernel online softmax
COMPUTE_DTYPE = jnp.bfloat16        # MXU operand dtype (f32 accumulation kept)


def _vmem_limit_bytes():
    """~75% of physical VMEM: ~48 MiB on v7x (64 MiB), ~96 MiB on v5e/v6e (128 MiB)."""
    try:
        cap = pltpu.get_tpu_info().vmem_capacity_bytes
        if not cap or cap < (32 << 20):
            cap = 64 << 20
    except Exception:
        cap = 64 << 20
    return int(cap * 3 // 4)


VMEM_LIMIT = _vmem_limit_bytes()


def _row_tile(n, preferred=(2048, 1024, 512, 256, 128, 64, 32, 16, 8)):
    """Largest preferred row-tile that divides n (falls back to full n)."""
    for t in preferred:
        if n % t == 0:
            return t
    return n


def _layernorm_math(x, g, b, eps):
    """torch-style LayerNorm: unbiased std, eps added to std (not to var)."""
    d = x.shape[-1]
    mean = jnp.mean(x, axis=-1, keepdims=True)
    var = jnp.sum((x - mean) ** 2, axis=-1, keepdims=True) * (1.0 / (d - 1))
    inv = pl.reciprocal(jnp.sqrt(var) + eps, approx=False)
    return g * (x - mean) * inv + b


# --------------------------------------------------------------------------
# Kernel A: fused attention sublayer, grid = (B,)
#   out[b] = x[b] + bo + concat_h(softmax(mask(Q_h K_h^T / sqrt(dk))) V_h) Wo
#   with Q/K/V = LN(x[b]) Wqkv + bqkv  (single LN, single wide QKV matmul)
# --------------------------------------------------------------------------

def _attn_sublayer_kernel(x_ref, mask_ref, g_ref, b_ref,
                          wqkv_ref, bqkv_ref, wo_ref, bo_ref,
                          o_ref, ctx_scr, *, eps, n_heads, kv_chunk):
    x = x_ref[0]                                   # [S, D] f32 (VMEM resident)
    s_len, d = x.shape
    dk = d // n_heads
    scale = 1.0 / math.sqrt(dk)
    cdt = COMPUTE_DTYPE

    # LayerNorm once per batch element (not per head)
    xn = _layernorm_math(x, g_ref[...], b_ref[...], eps)

    # Fused QKV projection: one [S,D]x[D,3D] MXU matmul, f32 accumulation
    qkv = jnp.dot(xn.astype(cdt), wqkv_ref[...],
                  preferred_element_type=jnp.float32) + bqkv_ref[...]   # [S, 3D]

    # Additive key-padding bias, hoisted out of the head/chunk loops
    bias = (mask_ref[0] - 1.0) * 1e9                                    # [1, S]

    if s_len % kv_chunk == 0 and s_len // kv_chunk > 1:
        n_chunks, tkv = s_len // kv_chunk, kv_chunk
    else:
        n_chunks, tkv = 1, s_len

    for h in range(n_heads):                       # static, small head loop
        q = lax.slice_in_dim(qkv, h * dk, (h + 1) * dk, axis=1).astype(cdt)
        k = lax.slice_in_dim(qkv, d + h * dk, d + (h + 1) * dk,
                             axis=1).astype(cdt)
        v = lax.slice_in_dim(qkv, 2 * d + h * dk, 2 * d + (h + 1) * dk,
                             axis=1).astype(cdt)

        if n_chunks == 1:
            s = lax.dot_general(q, k, (((1,), (1,)), ((), ())),
                                preferred_element_type=jnp.float32) * scale + bias
            m = jnp.max(s, axis=-1, keepdims=True)
            p = jnp.exp(s - m)
            l = jnp.sum(p, axis=-1, keepdims=True)
            acc = jnp.dot(p.astype(cdt), v, preferred_element_type=jnp.float32)
        else:
            # online softmax over KV chunks; fori_loop bounds live ranges
            def body(c, carry):
                m, l, acc = carry
                kc = lax.dynamic_slice_in_dim(k, c * tkv, tkv, axis=0)
                vc = lax.dynamic_slice_in_dim(v, c * tkv, tkv, axis=0)
                bc = lax.dynamic_slice_in_dim(bias, c * tkv, tkv, axis=1)
                s = lax.dot_general(q, kc, (((1,), (1,)), ((), ())),
                                    preferred_element_type=jnp.float32) * scale + bc
                m_new = jnp.maximum(m, jnp.max(s, axis=-1, keepdims=True))
                alpha = jnp.exp(m - m_new)
                p = jnp.exp(s - m_new)
                l = alpha * l + jnp.sum(p, axis=-1, keepdims=True)
                acc = alpha * acc + jnp.dot(p.astype(cdt), vc,
                                            preferred_element_type=jnp.float32)
                return m_new, l, acc

            init = (jnp.full((s_len, 1), -jnp.inf, jnp.float32),
                    jnp.zeros((s_len, 1), jnp.float32),
                    jnp.zeros((s_len, dk), jnp.float32))
            m, l, acc = lax.fori_loop(0, n_chunks, body, init)

        # normalized per-head context into its column slice of the f32 scratch
        ctx_scr[:, h * dk:(h + 1) * dk] = acc * pl.reciprocal(l, approx=False)

    # Single full-width output projection + residual + bias (once, not per head)
    out = x + bo_ref[...] + jnp.dot(ctx_scr[...].astype(cdt), wo_ref[...],
                                    preferred_element_type=jnp.float32)
    o_ref[0] = out.astype(o_ref.dtype)


def attn_sublayer(x, mask3, lp, *, n_heads, eps=EPS, kv_chunk=KV_CHUNK):
    B, S, D = x.shape
    const2 = lambda b: (0, 0)
    xmap = lambda b: (b, 0, 0)
    return pl.pallas_call(
        functools.partial(_attn_sublayer_kernel, eps=eps, n_heads=n_heads,
                          kv_chunk=kv_chunk),
        out_shape=jax.ShapeDtypeStruct((B, S, D), x.dtype),
        grid=(B,),
        in_specs=[
            pl.BlockSpec((1, S, D), xmap),            # x
            pl.BlockSpec((1, 1, S), xmap),            # key-padding mask
            pl.BlockSpec((1, D), const2),             # ln1 gamma
            pl.BlockSpec((1, D), const2),             # ln1 beta
            pl.BlockSpec((D, 3 * D), const2),         # Wqkv (bf16, resident over b)
            pl.BlockSpec((1, 3 * D), const2),         # bqkv
            pl.BlockSpec((D, D), const2),             # Wo   (bf16, resident over b)
            pl.BlockSpec((1, D), const2),             # bo
        ],
        out_specs=pl.BlockSpec((1, S, D), xmap),
        scratch_shapes=[pltpu.VMEM((S, D), jnp.float32)],   # per-head ctx columns
        compiler_params=pltpu.CompilerParams(
            dimension_semantics=("parallel",),
            vmem_limit_bytes=VMEM_LIMIT),
    )(x, mask3, lp["ln1_g"], lp["ln1_b"],
      lp["wqkv"], lp["bqkv"], lp["wo"], lp["bo"])


# --------------------------------------------------------------------------
# Kernel B: fused FFN sublayer   out = x + relu(LN(x) W1 + b1) W2 + b2
# row-tiled over B*S; weights stay VMEM-resident across row tiles.
# Optionally fuses the Encoder's final LayerNorm (last layer only).
# --------------------------------------------------------------------------

def _ffn_sublayer_kernel(x_ref, g2_ref, b2_ref, w1_ref, b1_ref, w2_ref, bb2_ref,
                         gf_ref, bf_ref, o_ref, *, eps, apply_final_ln):
    x = x_ref[...]                                                        # [tm, D]
    cdt = COMPUTE_DTYPE
    xn = _layernorm_math(x, g2_ref[...], b2_ref[...], eps)
    hid = jnp.dot(xn.astype(cdt), w1_ref[...],
                  preferred_element_type=jnp.float32) + b1_ref[...]
    hid = jnp.maximum(hid, 0.0)
    y = jnp.dot(hid.astype(cdt), w2_ref[...],
                preferred_element_type=jnp.float32) + bb2_ref[...]
    out = x + y
    if apply_final_ln:
        out = _layernorm_math(out, gf_ref[...], bf_ref[...], eps)
    o_ref[...] = out.astype(o_ref.dtype)


def ffn_sublayer(x2, lp, ln_f_g, ln_f_b, *, apply_final_ln, eps=EPS):
    R, D = x2.shape
    DFF = lp["w1"].shape[1]
    tm = _row_tile(R)
    const2 = lambda i: (0, 0)
    return pl.pallas_call(
        functools.partial(_ffn_sublayer_kernel, eps=eps,
                          apply_final_ln=apply_final_ln),
        out_shape=jax.ShapeDtypeStruct((R, D), x2.dtype),
        grid=(R // tm,),
        in_specs=[
            pl.BlockSpec((tm, D), lambda i: (i, 0)),
            pl.BlockSpec((1, D), const2),         # ln2 gamma
            pl.BlockSpec((1, D), const2),         # ln2 beta
            pl.BlockSpec((D, DFF), const2),       # W1 (bf16, resident)
            pl.BlockSpec((1, DFF), const2),       # b1
            pl.BlockSpec((DFF, D), const2),       # W2 (bf16, resident)
            pl.BlockSpec((1, D), const2),         # b2
            pl.BlockSpec((1, D), const2),         # final-LN gamma
            pl.BlockSpec((1, D), const2),         # final-LN beta
        ],
        out_specs=pl.BlockSpec((tm, D), lambda i: (i, 0)),
        compiler_params=pltpu.CompilerParams(
            dimension_semantics=("parallel",),
            vmem_limit_bytes=VMEM_LIMIT),
    )(x2, lp["ln2_g"], lp["ln2_b"], lp["w1"], lp["b1"], lp["w2"], lp["b2"],
      ln_f_g, ln_f_b)


# --------------------------------------------------------------------------
# Encoder forward (glue)
# --------------------------------------------------------------------------

def encoder_forward(x, mask, kparams, *, n_heads):
    B, S, D = x.shape
    mask3 = mask.reshape(B, 1, S).astype(jnp.float32)
    layers = kparams["layers"]
    n = len(layers)
    for i, lp in enumerate(layers):
        x = attn_sublayer(x, mask3, lp, n_heads=n_heads)           # attn + residual
        x = ffn_sublayer(x.reshape(B * S, D), lp,
                         kparams["ln_f_g"], kparams["ln_f_b"],
                         apply_final_ln=(i == n - 1)).reshape(B, S, D)
    return x


# --------------------------------------------------------------------------
# Parameter init (canonical torch-like layout) + kernel-layout packing
# --------------------------------------------------------------------------

def init_params(key, n_layers, d_model, h, d_ff):
    def lin(k, fan_in, fan_out):
        k1, k2 = jax.random.split(k)
        w = 0.02 * jax.random.normal(k1, (fan_in, fan_out), jnp.float32)
        b = 0.02 * jax.random.normal(k2, (fan_out,), jnp.float32)
        return w, b

    layers = []
    for lk in jax.random.split(key, n_layers):
        ks = jax.random.split(lk, 6)
        wq, bq = lin(ks[0], d_model, d_model)
        wk, bk = lin(ks[1], d_model, d_model)
        wv, bv = lin(ks[2], d_model, d_model)
        wo, bo = lin(ks[3], d_model, d_model)
        w1, b1 = lin(ks[4], d_model, d_ff)
        w2, b2 = lin(ks[5], d_ff, d_model)
        layers.append(dict(
            ln1_g=jnp.ones((d_model,), jnp.float32),
            ln1_b=jnp.zeros((d_model,), jnp.float32),
            ln2_g=jnp.ones((d_model,), jnp.float32),
            ln2_b=jnp.zeros((d_model,), jnp.float32),
            wq=wq, bq=bq, wk=wk, bk=bk, wv=wv, bv=bv, wo=wo, bo=bo,
            w1=w1, b1=b1, w2=w2, b2=b2))
    return dict(h=h, layers=layers,
                ln_f_g=jnp.ones((d_model,), jnp.float32),
                ln_f_b=jnp.zeros((d_model,), jnp.float32))


def prepare_params(params):
    """Pack canonical params into kernel layouts.

    Weight matrices (MXU operands) are stored in bf16 (halves HBM traffic and
    resident VMEM); biases and LayerNorm parameters stay f32.  All matmuls
    accumulate in f32 via preferred_element_type.
    """
    cdt = COMPUTE_DTYPE
    out_layers = []
    for lp in params["layers"]:
        D = lp["wq"].shape[0]
        out_layers.append(dict(
            ln1_g=lp["ln1_g"].reshape(1, D), ln1_b=lp["ln1_b"].reshape(1, D),
            ln2_g=lp["ln2_g"].reshape(1, D), ln2_b=lp["ln2_b"].reshape(1, D),
            wqkv=jnp.concatenate([lp["wq"], lp["wk"], lp["wv"]],
                                 axis=1).astype(cdt),               # [D, 3D]
            bqkv=jnp.concatenate([lp["bq"], lp["bk"], lp["bv"]]
                                 ).reshape(1, 3 * D),               # [1, 3D] f32
            wo=lp["wo"].astype(cdt), bo=lp["bo"].reshape(1, D),
            w1=lp["w1"].astype(cdt), b1=lp["b1"].reshape(1, -1),
            w2=lp["w2"].astype(cdt), b2=lp["b2"].reshape(1, -1)))
    return dict(layers=out_layers,
                ln_f_g=params["ln_f_g"].reshape(1, -1),
                ln_f_b=params["ln_f_b"].reshape(1, -1))


# --------------------------------------------------------------------------
# Pure-JAX reference (correctness check)
# --------------------------------------------------------------------------

def _ref_layernorm(x, g, b, eps=EPS):
    d = x.shape[-1]
    mean = jnp.mean(x, axis=-1, keepdims=True)
    var = jnp.sum((x - mean) ** 2, axis=-1, keepdims=True) / (d - 1)
    return g * (x - mean) / (jnp.sqrt(var) + eps) + b


def _ref_forward(x, mask, params):
    B, S, D = x.shape
    h = params["h"]
    dk = D // h
    mask4 = mask.reshape(B, 1, 1, S).astype(x.dtype)
    for lp in params["layers"]:
        xn = _ref_layernorm(x, lp["ln1_g"], lp["ln1_b"])
        q = (xn @ lp["wq"] + lp["bq"]).reshape(B, S, h, dk).transpose(0, 2, 1, 3)
        k = (xn @ lp["wk"] + lp["bk"]).reshape(B, S, h, dk).transpose(0, 2, 1, 3)
        v = (xn @ lp["wv"] + lp["bv"]).reshape(B, S, h, dk).transpose(0, 2, 1, 3)
        scores = jnp.einsum("bhqd,bhkd->bhqk", q, k) / (dk ** 0.5)
        scores = jnp.where(mask4 == 0, -1e9, scores)
        p = jax.nn.softmax(scores, axis=-1)
        ctx = jnp.einsum("bhqk,bhkd->bhqd", p, v).transpose(0, 2, 1, 3).reshape(B, S, D)
        x = x + (ctx @ lp["wo"] + lp["bo"])
        xn = _ref_layernorm(x, lp["ln2_g"], lp["ln2_b"])
        x = x + jnp.maximum(xn @ lp["w1"] + lp["b1"], 0.0) @ lp["w2"] + lp["b2"]
    return _ref_layernorm(x, params["ln_f_g"], params["ln_f_b"])


# --------------------------------------------------------------------------

if __name__ == "__main__":
    B, S, D, H, DFF, N = 2, 8, 32, 4, 64, 2

    key = jax.random.PRNGKey(0)
    kx, kp = jax.random.split(key)
    x = jax.random.normal(kx, (B, S, D), jnp.float32)
    # padding mask [B, 1, S]: batch 0 fully valid, batch 1 has 3 padded keys
    lengths = jnp.array([S, S - 3])
    mask = (jnp.arange(S)[None, None, :] < lengths[:, None, None]).astype(jnp.float32)

    params = init_params(kp, N, D, H, DFF)
    kparams = prepare_params(params)

    fwd = jax.jit(functools.partial(encoder_forward, n_heads=H))
    out = jax.block_until_ready(fwd(x, mask, kparams))

    ref = _ref_forward(x, mask, params)
    assert out.shape == (B, S, D)
    # tolerance covers bf16 MXU operands (accumulation / LN stats / softmax are f32)
    assert jnp.allclose(out, ref, rtol=2e-2, atol=2e-2), "mismatch vs JAX reference"

    print("KERNEL_OK")
</pallas_src>

<mosaic_0001>
module attributes {stable_mosaic.version = 11 : i64} {
  func.func @_ffn_sublayer_kernel(%arg0: i32, %arg1: memref<16x32xf32, #tpu.memory_space<vmem>>, %arg2: memref<1x32xf32, #tpu.memory_space<vmem>>, %arg3: memref<1x32xf32, #tpu.memory_space<vmem>>, %arg4: memref<32x64xbf16, #tpu.memory_space<vmem>>, %arg5: memref<1x64xf32, #tpu.memory_space<vmem>>, %arg6: memref<64x32xbf16, #tpu.memory_space<vmem>>, %arg7: memref<1x32xf32, #tpu.memory_space<vmem>>, %arg8: memref<1x32xf32, #tpu.memory_space<vmem>>, %arg9: memref<1x32xf32, #tpu.memory_space<vmem>>, %arg10: memref<16x32xf32, #tpu.memory_space<vmem>>) attributes {dimension_semantics = [#tpu.dimension_semantics<parallel>], iteration_bounds = array<i64: 1>, scalar_prefetch = 0 : i64, scratch_operands = 0 : i64, tpu.core_type = #tpu.core_type<tc>, window_params = [{transform_indices = @transform_0, window_bounds = array<i64: 16, 32>}, {pipeline_mode = #tpu.pipeline_mode<synchronous>, transform_indices = @transform_1, window_bounds = array<i64: 1, 32>}, {pipeline_mode = #tpu.pipeline_mode<synchronous>, transform_indices = @transform_2, window_bounds = array<i64: 1, 32>}, {pipeline_mode = #tpu.pipeline_mode<synchronous>, transform_indices = @transform_3, window_bounds = array<i64: 32, 64>}, {pipeline_mode = #tpu.pipeline_mode<synchronous>, transform_indices = @transform_4, window_bounds = array<i64: 1, 64>}, {pipeline_mode = #tpu.pipeline_mode<synchronous>, transform_indices = @transform_5, window_bounds = array<i64: 64, 32>}, {pipeline_mode = #tpu.pipeline_mode<synchronous>, transform_indices = @transform_6, window_bounds = array<i64: 1, 32>}, {pipeline_mode = #tpu.pipeline_mode<synchronous>, transform_indices = @transform_7, window_bounds = array<i64: 1, 32>}, {pipeline_mode = #tpu.pipeline_mode<synchronous>, transform_indices = @transform_8, window_bounds = array<i64: 1, 32>}, {transform_indices = @transform_9, window_bounds = array<i64: 16, 32>}]} {
    %c0 = arith.constant 0 : index
    %c0_0 = arith.constant 0 : index
    %0 = vector.load %arg1[%c0, %c0_0] : memref<16x32xf32, #tpu.memory_space<vmem>>, vector<16x32xf32>
    %c0_1 = arith.constant 0 : index
    %c0_2 = arith.constant 0 : index
    %1 = vector.load %arg2[%c0_1, %c0_2] : memref<1x32xf32, #tpu.memory_space<vmem>>, vector<1x32xf32>
    %c0_3 = arith.constant 0 : index
    %c0_4 = arith.constant 0 : index
    %2 = vector.load %arg3[%c0_3, %c0_4] : memref<1x32xf32, #tpu.memory_space<vmem>>, vector<1x32xf32>
    %cst = arith.constant dense<0.000000e+00> : vector<16xf32>
    %3 = vector.multi_reduction <add>, %0, %cst [1] : vector<16x32xf32> to vector<16xf32>
    %4 = vector.shape_cast %3 : vector<16xf32> to vector<16x1xf32>
    %cst_5 = arith.constant 3.200000e+01 : f32
    %5 = vector.broadcast %cst_5 : f32 to vector<16x1xf32>
    %6 = arith.divf %4, %5 : vector<16x1xf32>
    %7 = vector.broadcast %6 : vector<16x1xf32> to vector<16x32xf32>
    %8 = arith.subf %0, %7 : vector<16x32xf32>
    %9 = arith.mulf %8, %8 : vector<16x32xf32>
    %cst_6 = arith.constant dense<0.000000e+00> : vector<16xf32>
    %10 = vector.multi_reduction <add>, %9, %cst_6 [1] : vector<16x32xf32> to vector<16xf32>
    %11 = vector.shape_cast %10 : vector<16xf32> to vector<16x1xf32>
    %cst_7 = arith.constant 0.0322580636 : f32
    %12 = vector.broadcast %cst_7 : f32 to vector<16x1xf32>
    %13 = arith.mulf %11, %12 : vector<16x1xf32>
    %14 = math.sqrt %13 : vector<16x1xf32>
    %cst_8 = arith.constant 9.99999997E-7 : f32
    %15 = vector.broadcast %cst_8 : f32 to vector<16x1xf32>
    %16 = arith.addf %14, %15 : vector<16x1xf32>
    %17 = tpu.reciprocal %16 : vector<16x1xf32> -> vector<16x1xf32>
    %18 = vector.broadcast %6 : vector<16x1xf32> to vector<16x32xf32>
    %19 = arith.subf %0, %18 : vector<16x32xf32>
    %20 = vector.broadcast %1 : vector<1x32xf32> to vector<16x32xf32>
    %21 = arith.mulf %20, %19 : vector<16x32xf32>
    %22 = vector.broadcast %17 : vector<16x1xf32> to vector<16x32xf32>
    %23 = arith.mulf %21, %22 : vector<16x32xf32>
    %24 = vector.broadcast %2 : vector<1x32xf32> to vector<16x32xf32>
    %25 = arith.addf %23, %24 : vector<16x32xf32>
    %26 = arith.truncf %25 : vector<16x32xf32> to vector<16x32xbf16>
    %c0_9 = arith.constant 0 : index
    %c0_10 = arith.constant 0 : index
    %27 = vector.load %arg4[%c0_9, %c0_10] : memref<32x64xbf16, #tpu.memory_space<vmem>>, vector<32x64xbf16>
    %cst_11 = arith.constant dense<0.000000e+00> : vector<16x64xf32>
    %28 = tpu.matmul %26, %27, %cst_11 {dimension_numbers = #tpu.dot_dimension_numbers<[1], [0], [0], [1], [0, 0, 1, 1], [], []>} : vector<16x32xbf16>, vector<32x64xbf16>, vector<16x64xf32> -> vector<16x64xf32>
    %c0_12 = arith.constant 0 : index
    %c0_13 = arith.constant 0 : index
    %29 = vector.load %arg5[%c0_12, %c0_13] : memref<1x64xf32, #tpu.memory_space<vmem>>, vector<1x64xf32>
    %30 = vector.broadcast %29 : vector<1x64xf32> to vector<16x64xf32>
    %31 = arith.addf %28, %30 : vector<16x64xf32>
    %cst_14 = arith.constant 0.000000e+00 : f32
    %32 = vector.broadcast %cst_14 : f32 to vector<16x64xf32>
    %33 = arith.maximumf %31, %32 : vector<16x64xf32>
    %34 = arith.truncf %33 : vector<16x64xf32> to vector<16x64xbf16>
    %c0_15 = arith.constant 0 : index
    %c0_16 = arith.constant 0 : index
    %35 = vector.load %arg6[%c0_15, %c0_16] : memref<64x32xbf16, #tpu.memory_space<vmem>>, vector<64x32xbf16>
    %cst_17 = arith.constant dense<0.000000e+00> : vector<16x32xf32>
    %36 = tpu.matmul %34, %35, %cst_17 {dimension_numbers = #tpu.dot_dimension_numbers<[1], [0], [0], [1], [0, 0, 1, 1], [], []>} : vector<16x64xbf16>, vector<64x32xbf16>, vector<16x32xf32> -> vector<16x32xf32>
    %c0_18 = arith.constant 0 : index
    %c0_19 = arith.constant 0 : index
    %37 = vector.load %arg7[%c0_18, %c0_19] : memref<1x32xf32, #tpu.memory_space<vmem>>, vector<1x32xf32>
    %38 = vector.broadcast %37 : vector<1x32xf32> to vector<16x32xf32>
    %39 = arith.addf %36, %38 : vector<16x32xf32>
    %40 = arith.addf %0, %39 : vector<16x32xf32>
    %c0_20 = arith.constant 0 : index
    %c0_21 = arith.constant 0 : index
    %41 = vector.load %arg10[%c0_20, %c0_21] : memref<16x32xf32, #tpu.memory_space<vmem>>, vector<16x32xf32>
    tpu.vector_store %arg10[%c0_20, %c0_21], %40 {strides = array<i32>} : memref<16x32xf32, #tpu.memory_space<vmem>>, vector<16x32xf32>,
    return
  }
  func.func @transform_0(%arg0: i32) -> (i32, i32) {
    %c0_i32 = arith.constant 0 : i32
    %c0_i32_0 = arith.constant 0 : i32
    return %arg0, %c0_i32 : i32, i32
  }
  func.func @transform_1(%arg0: i32) -> (i32, i32) {
    %c0_i32 = arith.constant 0 : i32
    %c0_i32_0 = arith.constant 0 : i32
    %c0_i32_1 = arith.constant 0 : i32
    return %c0_i32, %c0_i32_0 : i32, i32
  }
  func.func @transform_2(%arg0: i32) -> (i32, i32) {
    %c0_i32 = arith.constant 0 : i32
    %c0_i32_0 = arith.constant 0 : i32
    %c0_i32_1 = arith.constant 0 : i32
    return %c0_i32, %c0_i32_0 : i32, i32
  }
  func.func @transform_3(%arg0: i32) -> (i32, i32) {
    %c0_i32 = arith.constant 0 : i32
    %c0_i32_0 = arith.constant 0 : i32
    %c0_i32_1 = arith.constant 0 : i32
    return %c0_i32, %c0_i32_0 : i32, i32
  }
  func.func @transform_4(%arg0: i32) -> (i32, i32) {
    %c0_i32 = arith.constant 0 : i32
    %c0_i32_0 = arith.constant 0 : i32
    %c0_i32_1 = arith.constant 0 : i32
    return %c0_i32, %c0_i32_0 : i32, i32
  }
  func.func @transform_5(%arg0: i32) -> (i32, i32) {
    %c0_i32 = arith.constant 0 : i32
    %c0_i32_0 = arith.constant 0 : i32
    %c0_i32_1 = arith.constant 0 : i32
    return %c0_i32, %c0_i32_0 : i32, i32
  }
  func.func @transform_6(%arg0: i32) -> (i32, i32) {
    %c0_i32 = arith.constant 0 : i32
    %c0_i32_0 = arith.constant 0 : i32
    %c0_i32_1 = arith.constant 0 : i32
    return %c0_i32, %c0_i32_0 : i32, i32
  }
  func.func @transform_7(%arg0: i32) -> (i32, i32) {
    %c0_i32 = arith.constant 0 : i32
    %c0_i32_0 = arith.constant 0 : i32
    %c0_i32_1 = arith.constant 0 : i32
    return %c0_i32, %c0_i32_0 : i32, i32
  }
  func.func @transform_8(%arg0: i32) -> (i32, i32) {
    %c0_i32 = arith.constant 0 : i32
    %c0_i32_0 = arith.constant 0 : i32
    %c0_i32_1 = arith.constant 0 : i32
    return %c0_i32, %c0_i32_0 : i32, i32
  }
  func.func @transform_9(%arg0: i32) -> (i32, i32) {
    %c0_i32 = arith.constant 0 : i32
    %c0_i32_0 = arith.constant 0 : i32
    return %arg0, %c0_i32 : i32, i32
  }
}

module attributes {stable_mosaic.version = 11 : i64} {
  func.func @_attn_sublayer_kernel(%arg0: i32, %arg1: memref<1x8x32xf32, #tpu.memory_space<vmem>>, %arg2: memref<1x1x8xf32, #tpu.memory_space<vmem>>, %arg3: memref<1x32xf32, #tpu.memory_space<vmem>>, %arg4: memref<1x32xf32, #tpu.memory_space<vmem>>, %arg5: memref<32x96xbf16, #tpu.memory_space<vmem>>, %arg6: memref<1x96xf32, #tpu.memory_space<vmem>>, %arg7: memref<32x32xbf16, #tpu.memory_space<vmem>>, %arg8: memref<1x32xf32, #tpu.memory_space<vmem>>, %arg9: memref<1x8x32xf32, #tpu.memory_space<vmem>>, %arg10: memref<8x32xf32, #tpu.memory_space<vmem>>) attributes {dimension_semantics = [#tpu.dimension_semantics<parallel>], iteration_bounds = array<i64: 2>, scalar_prefetch = 0 : i64, scratch_operands = 1 : i64, tpu.core_type = #tpu.core_type<tc>, window_params = [{transform_indices = @transform_0, window_bounds = array<i64: 1, 8, 32>}, {transform_indices = @transform_1, window_bounds = array<i64: 1, 1, 8>}, {pipeline_mode = #tpu.pipeline_mode<synchronous>, transform_indices = @transform_2, window_bounds = array<i64: 1, 32>}, {pipeline_mode = #tpu.pipeline_mode<synchronous>, transform_indices = @transform_3, window_bounds = array<i64: 1, 32>}, {pipeline_mode = #tpu.pipeline_mode<synchronous>, transform_indices = @transform_4, window_bounds = array<i64: 32, 96>}, {pipeline_mode = #tpu.pipeline_mode<synchronous>, transform_indices = @transform_5, window_bounds = array<i64: 1, 96>}, {pipeline_mode = #tpu.pipeline_mode<synchronous>, transform_indices = @transform_6, window_bounds = array<i64: 32, 32>}, {pipeline_mode = #tpu.pipeline_mode<synchronous>, transform_indices = @transform_7, window_bounds = array<i64: 1, 32>}, {transform_indices = @transform_8, window_bounds = array<i64: 1, 8, 32>}]} {
    %c0 = arith.constant 0 : index
    %c0_0 = arith.constant 0 : index
    %c0_1 = arith.constant 0 : index
    %0 = vector.load %arg1[%c0, %c0_0, %c0_1] : memref<1x8x32xf32, #tpu.memory_space<vmem>>, vector<1x8x32xf32>
    %1 = vector.shape_cast %0 : vector<1x8x32xf32> to vector<8x32xf32>
    %c0_2 = arith.constant 0 : index
    %c0_3 = arith.constant 0 : index
    %2 = vector.load %arg3[%c0_2, %c0_3] : memref<1x32xf32, #tpu.memory_space<vmem>>, vector<1x32xf32>
    %c0_4 = arith.constant 0 : index
    %c0_5 = arith.constant 0 : index
    %3 = vector.load %arg4[%c0_4, %c0_5] : memref<1x32xf32, #tpu.memory_space<vmem>>, vector<1x32xf32>
    %cst = arith.constant dense<0.000000e+00> : vector<8xf32>
    %4 = vector.multi_reduction <add>, %1, %cst [1] : vector<8x32xf32> to vector<8xf32>
    %5 = vector.shape_cast %4 : vector<8xf32> to vector<8x1xf32>
    %cst_6 = arith.constant 3.200000e+01 : f32
    %6 = vector.broadcast %cst_6 : f32 to vector<8x1xf32>
    %7 = arith.divf %5, %6 : vector<8x1xf32>
    %8 = vector.broadcast %7 : vector<8x1xf32> to vector<8x32xf32>
    %9 = arith.subf %1, %8 : vector<8x32xf32>
    %10 = arith.mulf %9, %9 : vector<8x32xf32>
    %cst_7 = arith.constant dense<0.000000e+00> : vector<8xf32>
    %11 = vector.multi_reduction <add>, %10, %cst_7 [1] : vector<8x32xf32> to vector<8xf32>
    %12 = vector.shape_cast %11 : vector<8xf32> to vector<8x1xf32>
    %cst_8 = arith.constant 0.0322580636 : f32
    %13 = vector.broadcast %cst_8 : f32 to vector<8x1xf32>
    %14 = arith.mulf %12, %13 : vector<8x1xf32>
    %15 = math.sqrt %14 : vector<8x1xf32>
    %cst_9 = arith.constant 9.99999997E-7 : f32
    %16 = vector.broadcast %cst_9 : f32 to vector<8x1xf32>
    %17 = arith.addf %15, %16 : vector<8x1xf32>
    %18 = tpu.reciprocal %17 : vector<8x1xf32> -> vector<8x1xf32>
    %19 = vector.broadcast %7 : vector<8x1xf32> to vector<8x32xf32>
    %20 = arith.subf %1, %19 : vector<8x32xf32>
    %21 = vector.broadcast %2 : vector<1x32xf32> to vector<8x32xf32>
    %22 = arith.mulf %21, %20 : vector<8x32xf32>
    %23 = vector.broadcast %18 : vector<8x1xf32> to vector<8x32xf32>
    %24 = arith.mulf %22, %23 : vector<8x32xf32>
    %25 = vector.broadcast %3 : vector<1x32xf32> to vector<8x32xf32>
    %26 = arith.addf %24, %25 : vector<8x32xf32>
    %27 = arith.truncf %26 : vector<8x32xf32> to vector<8x32xbf16>
    %c0_10 = arith.constant 0 : index
    %c0_11 = arith.constant 0 : index
    %28 = vector.load %arg5[%c0_10, %c0_11] : memref<32x96xbf16, #tpu.memory_space<vmem>>, vector<32x96xbf16>
    %cst_12 = arith.constant dense<0.000000e+00> : vector<8x96xf32>
    %29 = tpu.matmul %27, %28, %cst_12 {dimension_numbers = #tpu.dot_dimension_numbers<[1], [0], [0], [1], [0, 0, 1, 1], [], []>} : vector<8x32xbf16>, vector<32x96xbf16>, vector<8x96xf32> -> vector<8x96xf32>
    %c0_13 = arith.constant 0 : index
    %c0_14 = arith.constant 0 : index
    %30 = vector.load %arg6[%c0_13, %c0_14] : memref<1x96xf32, #tpu.memory_space<vmem>>, vector<1x96xf32>
    %31 = vector.broadcast %30 : vector<1x96xf32> to vector<8x96xf32>
    %32 = arith.addf %29, %31 : vector<8x96xf32>
    %c0_15 = arith.constant 0 : index
    %c0_16 = arith.constant 0 : index
    %c0_17 = arith.constant 0 : index
    %33 = vector.load %arg2[%c0_15, %c0_16, %c0_17] : memref<1x1x8xf32, #tpu.memory_space<vmem>>, vector<1x1x8xf32>
    %34 = vector.shape_cast %33 : vector<1x1x8xf32> to vector<1x8xf32>
    %cst_18 = arith.constant 1.000000e+00 : f32
    %35 = vector.broadcast %cst_18 : f32 to vector<1x8xf32>
    %36 = arith.subf %34, %35 : vector<1x8xf32>
    %cst_19 = arith.constant 1.000000e+09 : f32
    %37 = vector.broadcast %cst_19 : f32 to vector<1x8xf32>
    %38 = arith.mulf %36, %37 : vector<1x8xf32>
    %39 = vector.extract_strided_slice %32 {offsets = [0, 0], sizes = [8, 8], strides = [1, 1]} : vector<8x96xf32> to vector<8x8xf32>
    %40 = arith.truncf %39 : vector<8x8xf32> to vector<8x8xbf16>
    %41 = vector.extract_strided_slice %32 {offsets = [0, 32], sizes = [8, 8], strides = [1, 1]} : vector<8x96xf32> to vector<8x8xf32>
    %42 = arith.truncf %41 : vector<8x8xf32> to vector<8x8xbf16>
    %43 = vector.extract_strided_slice %32 {offsets = [0, 64], sizes = [8, 8], strides = [1, 1]} : vector<8x96xf32> to vector<8x8xf32>
    %44 = arith.truncf %43 : vector<8x8xf32> to vector<8x8xbf16>
    %cst_20 = arith.constant dense<0.000000e+00> : vector<8x8xf32>
    %45 = tpu.matmul %40, %42, %cst_20 {dimension_numbers = #tpu.dot_dimension_numbers<[1], [1], [0], [0], [0, 0, 1, 0], [], []>} : vector<8x8xbf16>, vector<8x8xbf16>, vector<8x8xf32> -> vector<8x8xf32>
    %cst_21 = arith.constant 0.353553385 : f32
    %46 = vector.broadcast %cst_21 : f32 to vector<8x8xf32>
    %47 = arith.mulf %45, %46 : vector<8x8xf32>
    %48 = vector.broadcast %38 : vector<1x8xf32> to vector<8x8xf32>
    %49 = arith.addf %47, %48 : vector<8x8xf32>
    %cst_22 = arith.constant dense<0xFF800000> : vector<8xf32>
    %50 = vector.multi_reduction <maximumf>, %49, %cst_22 [1] : vector<8x8xf32> to vector<8xf32>
    %51 = vector.shape_cast %50 : vector<8xf32> to vector<8x1xf32>
    %52 = vector.broadcast %51 : vector<8x1xf32> to vector<8x8xf32>
    %53 = arith.subf %49, %52 : vector<8x8xf32>
    %54 = math.exp %53 : vector<8x8xf32>
    %cst_23 = arith.constant dense<0.000000e+00> : vector<8xf32>
    %55 = vector.multi_reduction <add>, %54, %cst_23 [1] : vector<8x8xf32> to vector<8xf32>
    %56 = vector.shape_cast %55 : vector<8xf32> to vector<8x1xf32>
    %57 = arith.truncf %54 : vector<8x8xf32> to vector<8x8xbf16>
    %cst_24 = arith.constant dense<0.000000e+00> : vector<8x8xf32>
    %58 = tpu.matmul %57, %44, %cst_24 {dimension_numbers = #tpu.dot_dimension_numbers<[1], [0], [0], [1], [0, 0, 1, 1], [], []>} : vector<8x8xbf16>, vector<8x8xbf16>, vector<8x8xf32> -> vector<8x8xf32>
    %59 = tpu.reciprocal %56 : vector<8x1xf32> -> vector<8x1xf32>
    %60 = vector.broadcast %59 : vector<8x1xf32> to vector<8x8xf32>
    %61 = arith.mulf %58, %60 : vector<8x8xf32>
    %c0_25 = arith.constant 0 : index
    %c0_26 = arith.constant 0 : index
    %62 = vector.load %arg10[%c0_25, %c0_26] : memref<8x32xf32, #tpu.memory_space<vmem>>, vector<8x8xf32>
    tpu.vector_store %arg10[%c0_25, %c0_26], %61 {strides = array<i32>} : memref<8x32xf32, #tpu.memory_space<vmem>>, vector<8x8xf32>,
    %63 = vector.extract_strided_slice %32 {offsets = [0, 8], sizes = [8, 8], strides = [1, 1]} : vector<8x96xf32> to vector<8x8xf32>
    %64 = arith.truncf %63 : vector<8x8xf32> to vector<8x8xbf16>
    %65 = vector.extract_strided_slice %32 {offsets = [0, 40], sizes = [8, 8], strides = [1, 1]} : vector<8x96xf32> to vector<8x8xf32>
    %66 = arith.truncf %65 : vector<8x8xf32> to vector<8x8xbf16>
    %67 = vector.extract_strided_slice %32 {offsets = [0, 72], sizes = [8, 8], strides = [1, 1]} : vector<8x96xf32> to vector<8x8xf32>
    %68 = arith.truncf %67 : vector<8x8xf32> to vector<8x8xbf16>
    %cst_27 = arith.constant dense<0.000000e+00> : vector<8x8xf32>
    %69 = tpu.matmul %64, %66, %cst_27 {dimension_numbers = #tpu.dot_dimension_numbers<[1], [1], [0], [0], [0, 0, 1, 0], [], []>} : vector<8x8xbf16>, vector<8x8xbf16>, vector<8x8xf32> -> vector<8x8xf32>
    %cst_28 = arith.constant 0.353553385 : f32
    %70 = vector.broadcast %cst_28 : f32 to vector<8x8xf32>
    %71 = arith.mulf %69, %70 : vector<8x8xf32>
    %72 = vector.broadcast %38 : vector<1x8xf32> to vector<8x8xf32>
    %73 = arith.addf %71, %72 : vector<8x8xf32>
    %cst_29 = arith.constant dense<0xFF800000> : vector<8xf32>
    %74 = vector.multi_reduction <maximumf>, %73, %cst_29 [1] : vector<8x8xf32> to vector<8xf32>
    %75 = vector.shape_cast %74 : vector<8xf32> to vector<8x1xf32>
    %76 = vector.broadcast %75 : vector<8x1xf32> to vector<8x8xf32>
    %77 = arith.subf %73, %76 : vector<8x8xf32>
    %78 = math.exp %77 : vector<8x8xf32>
    %cst_30 = arith.constant dense<0.000000e+00> : vector<8xf32>
    %79 = vector.multi_reduction <add>, %78, %cst_30 [1] : vector<8x8xf32> to vector<8xf32>
    %80 = vector.shape_cast %79 : vector<8xf32> to vector<8x1xf32>
    %81 = arith.truncf %78 : vector<8x8xf32> to vector<8x8xbf16>
    %cst_31 = arith.constant dense<0.000000e+00> : vector<8x8xf32>
    %82 = tpu.matmul %81, %68, %cst_31 {dimension_numbers = #tpu.dot_dimension_numbers<[1], [0], [0], [1], [0, 0, 1, 1], [], []>} : vector<8x8xbf16>, vector<8x8xbf16>, vector<8x8xf32> -> vector<8x8xf32>
    %83 = tpu.reciprocal %80 : vector<8x1xf32> -> vector<8x1xf32>
    %84 = vector.broadcast %83 : vector<8x1xf32> to vector<8x8xf32>
    %85 = arith.mulf %82, %84 : vector<8x8xf32>
    %c0_32 = arith.constant 0 : index
    %c8 = arith.constant 8 : index
    %86 = vector.load %arg10[%c0_32, %c8] : memref<8x32xf32, #tpu.memory_space<vmem>>, vector<8x8xf32>
    tpu.vector_store %arg10[%c0_32, %c8], %85 {strides = array<i32>} : memref<8x32xf32, #tpu.memory_space<vmem>>, vector<8x8xf32>,
    %87 = vector.extract_strided_slice %32 {offsets = [0, 16], sizes = [8, 8], strides = [1, 1]} : vector<8x96xf32> to vector<8x8xf32>
    %88 = arith.truncf %87 : vector<8x8xf32> to vector<8x8xbf16>
    %89 = vector.extract_strided_slice %32 {offsets = [0, 48], sizes = [8, 8], strides = [1, 1]} : vector<8x96xf32> to vector<8x8xf32>
    %90 = arith.truncf %89 : vector<8x8xf32> to vector<8x8xbf16>
    %91 = vector.extract_strided_slice %32 {offsets = [0, 80], sizes = [8, 8], strides = [1, 1]} : vector<8x96xf32> to vector<8x8xf32>
    %92 = arith.truncf %91 : vector<8x8xf32> to vector<8x8xbf16>
    %cst_33 = arith.constant dense<0.000000e+00> : vector<8x8xf32>
    %93 = tpu.matmul %88, %90, %cst_33 {dimension_numbers = #tpu.dot_dimension_numbers<[1], [1], [0], [0], [0, 0, 1, 0], [], []>} : vector<8x8xbf16>, vector<8x8xbf16>, vector<8x8xf32> -> vector<8x8xf32>
    %cst_34 = arith.constant 0.353553385 : f32
    %94 = vector.broadcast %cst_34 : f32 to vector<8x8xf32>
    %95 = arith.mulf %93, %94 : vector<8x8xf32>
    %96 = vector.broadcast %38 : vector<1x8xf32> to vector<8x8xf32>
    %97 = arith.addf %95, %96 : vector<8x8xf32>
    %cst_35 = arith.constant dense<0xFF800000> : vector<8xf32>
    %98 = vector.multi_reduction <maximumf>, %97, %cst_35 [1] : vector<8x8xf32> to vector<8xf32>
    %99 = vector.shape_cast %98 : vector<8xf32> to vector<8x1xf32>
    %100 = vector.broadcast %99 : vector<8x1xf32> to vector<8x8xf32>
    %101 = arith.subf %97, %100 : vector<8x8xf32>
    %102 = math.exp %101 : vector<8x8xf32>
    %cst_36 = arith.constant dense<0.000000e+00> : vector<8xf32>
    %103 = vector.multi_reduction <add>, %102, %cst_36 [1] : vector<8x8xf32> to vector<8xf32>
    %104 = vector.shape_cast %103 : vector<8xf32> to vector<8x1xf32>
    %105 = arith.truncf %102 : vector<8x8xf32> to vector<8x8xbf16>
    %cst_37 = arith.constant dense<0.000000e+00> : vector<8x8xf32>
    %106 = tpu.matmul %105, %92, %cst_37 {dimension_numbers = #tpu.dot_dimension_numbers<[1], [0], [0], [1], [0, 0, 1, 1], [], []>} : vector<8x8xbf16>, vector<8x8xbf16>, vector<8x8xf32> -> vector<8x8xf32>
    %107 = tpu.reciprocal %104 : vector<8x1xf32> -> vector<8x1xf32>
    %108 = vector.broadcast %107 : vector<8x1xf32> to vector<8x8xf32>
    %109 = arith.mulf %106, %108 : vector<8x8xf32>
    %c0_38 = arith.constant 0 : index
    %c16 = arith.constant 16 : index
    %110 = vector.load %arg10[%c0_38, %c16] : memref<8x32xf32, #tpu.memory_space<vmem>>, vector<8x8xf32>
    tpu.vector_store %arg10[%c0_38, %c16], %109 {strides = array<i32>} : memref<8x32xf32, #tpu.memory_space<vmem>>, vector<8x8xf32>,
    %111 = vector.extract_strided_slice %32 {offsets = [0, 24], sizes = [8, 8], strides = [1, 1]} : vector<8x96xf32> to vector<8x8xf32>
    %112 = arith.truncf %111 : vector<8x8xf32> to vector<8x8xbf16>
    %113 = vector.extract_strided_slice %32 {offsets = [0, 56], sizes = [8, 8], strides = [1, 1]} : vector<8x96xf32> to vector<8x8xf32>
    %114 = arith.truncf %113 : vector<8x8xf32> to vector<8x8xbf16>
    %115 = vector.extract_strided_slice %32 {offsets = [0, 88], sizes = [8, 8], strides = [1, 1]} : vector<8x96xf32> to vector<8x8xf32>
    %116 = arith.truncf %115 : vector<8x8xf32> to vector<8x8xbf16>
    %cst_39 = arith.constant dense<0.000000e+00> : vector<8x8xf32>
    %117 = tpu.matmul %112, %114, %cst_39 {dimension_numbers = #tpu.dot_dimension_numbers<[1], [1], [0], [0], [0, 0, 1, 0], [], []>} : vector<8x8xbf16>, vector<8x8xbf16>, vector<8x8xf32> -> vector<8x8xf32>
    %cst_40 = arith.constant 0.353553385 : f32
    %118 = vector.broadcast %cst_40 : f32 to vector<8x8xf32>
    %119 = arith.mulf %117, %118 : vector<8x8xf32>
    %120 = vector.broadcast %38 : vector<1x8xf32> to vector<8x8xf32>
    %121 = arith.addf %119, %120 : vector<8x8xf32>
    %cst_41 = arith.constant dense<0xFF800000> : vector<8xf32>
    %122 = vector.multi_reduction <maximumf>, %121, %cst_41 [1] : vector<8x8xf32> to vector<8xf32>
    %123 = vector.shape_cast %122 : vector<8xf32> to vector<8x1xf32>
    %124 = vector.broadcast %123 : vector<8x1xf32> to vector<8x8xf32>
    %125 = arith.subf %121, %124 : vector<8x8xf32>
    %126 = math.exp %125 : vector<8x8xf32>
    %cst_42 = arith.constant dense<0.000000e+00> : vector<8xf32>
    %127 = vector.multi_reduction <add>, %126, %cst_42 [1] : vector<8x8xf32> to vector<8xf32>
    %128 = vector.shape_cast %127 : vector<8xf32> to vector<8x1xf32>
    %129 = arith.truncf %126 : vector<8x8xf32> to vector<8x8xbf16>
    %cst_43 = arith.constant dense<0.000000e+00> : vector<8x8xf32>
    %130 = tpu.matmul %129, %116, %cst_43 {dimension_numbers = #tpu.dot_dimension_numbers<[1], [0], [0], [1], [0, 0, 1, 1], [], []>} : vector<8x8xbf16>, vector<8x8xbf16>, vector<8x8xf32> -> vector<8x8xf32>
    %131 = tpu.reciprocal %128 : vector<8x1xf32> -> vector<8x1xf32>
    %132 = vector.broadcast %131 : vector<8x1xf32> to vector<8x8xf32>
    %133 = arith.mulf %130, %132 : vector<8x8xf32>
    %c0_44 = arith.constant 0 : index
    %c24 = arith.constant 24 : index
    %134 = vector.load %arg10[%c0_44, %c24] : memref<8x32xf32, #tpu.memory_space<vmem>>, vector<8x8xf32>
    tpu.vector_store %arg10[%c0_44, %c24], %133 {strides = array<i32>} : memref<8x32xf32, #tpu.memory_space<vmem>>, vector<8x8xf32>,
    %c0_45 = arith.constant 0 : index
    %c0_46 = arith.constant 0 : index
    %135 = vector.load %arg8[%c0_45, %c0_46] : memref<1x32xf32, #tpu.memory_space<vmem>>, vector<1x32xf32>
    %136 = vector.broadcast %135 : vector<1x32xf32> to vector<8x32xf32>
    %137 = arith.addf %1, %136 : vector<8x32xf32>
    %c0_47 = arith.constant 0 : index
    %c0_48 = arith.constant 0 : index
    %138 = vector.load %arg10[%c0_47, %c0_48] : memref<8x32xf32, #tpu.memory_space<vmem>>, vector<8x32xf32>
    %139 = arith.truncf %138 : vector<8x32xf32> to vector<8x32xbf16>
    %c0_49 = arith.constant 0 : index
    %c0_50 = arith.constant 0 : index
    %140 = vector.load %arg7[%c0_49, %c0_50] : memref<32x32xbf16, #tpu.memory_space<vmem>>, vector<32x32xbf16>
    %cst_51 = arith.constant dense<0.000000e+00> : vector<8x32xf32>
    %141 = tpu.matmul %139, %140, %cst_51 {dimension_numbers = #tpu.dot_dimension_numbers<[1], [0], [0], [1], [0, 0, 1, 1], [], []>} : vector<8x32xbf16>, vector<32x32xbf16>, vector<8x32xf32> -> vector<8x32xf32>
    %142 = arith.addf %137, %141 : vector<8x32xf32>
    %c0_52 = arith.constant 0 : index
    %c0_53 = arith.constant 0 : index
    %c0_54 = arith.constant 0 : index
    %143 = vector.load %arg9[%c0_52, %c0_53, %c0_54] : memref<1x8x32xf32, #tpu.memory_space<vmem>>, vector<1x8x32xf32>
    %144 = vector.shape_cast %143 : vector<1x8x32xf32> to vector<8x32xf32>
    %145 = vector.shape_cast %142 : vector<8x32xf32> to vector<1x8x32xf32>
    tpu.vector_store %arg9[%c0_52, %c0_53, %c0_54], %145 {strides = array<i32>} : memref<1x8x32xf32, #tpu.memory_space<vmem>>, vector<1x8x32xf32>,
    return
  }
  func.func @transform_0(%arg0: i32) -> (i32, i32, i32) {
    %c0_i32 = arith.constant 0 : i32
    %c0_i32_0 = arith.constant 0 : i32
    %c0_i32_1 = arith.constant 0 : i32
    return %arg0, %c0_i32, %c0_i32_0 : i32, i32, i32
  }
  func.func @transform_1(%arg0: i32) -> (i32, i32, i32) {
    %c0_i32 = arith.constant 0 : i32
    %c0_i32_0 = arith.constant 0 : i32
    %c0_i32_1 = arith.constant 0 : i32
    return %arg0, %c0_i32, %c0_i32_0 : i32, i32, i32
  }
  func.func @transform_2(%arg0: i32) -> (i32, i32) {
    %c0_i32 = arith.constant 0 : i32
    %c0_i32_0 = arith.constant 0 : i32
    %c0_i32_1 = arith.constant 0 : i32
    return %c0_i32, %c0_i32_0 : i32, i32
  }
  func.func @transform_3(%arg0: i32) -> (i32, i32) {
    %c0_i32 = arith.constant 0 : i32
    %c0_i32_0 = arith.constant 0 : i32
    %c0_i32_1 = arith.constant 0 : i32
    return %c0_i32, %c0_i32_0 : i32, i32
  }
  func.func @transform_4(%arg0: i32) -> (i32, i32) {
    %c0_i32 = arith.constant 0 : i32
    %c0_i32_0 = arith.constant 0 : i32
    %c0_i32_1 = arith.constant 0 : i32
    return %c0_i32, %c0_i32_0 : i32, i32
  }
  func.func @transform_5(%arg0: i32) -> (i32, i32) {
    %c0_i32 = arith.constant 0 : i32
    %c0_i32_0 = arith.constant 0 : i32
    %c0_i32_1 = arith.constant 0 : i32
    return %c0_i32, %c0_i32_0 : i32, i32
  }
  func.func @transform_6(%arg0: i32) -> (i32, i32) {
    %c0_i32 = arith.constant 0 : i32
    %c0_i32_0 = arith.constant 0 : i32
    %c0_i32_1 = arith.constant 0 : i32
    return %c0_i32, %c0_i32_0 : i32, i32
  }
  func.func @transform_7(%arg0: i32) -> (i32, i32) {
    %c0_i32 = arith.constant 0 : i32
    %c0_i32_0 = arith.constant 0 : i32
    %c0_i32_1 = arith.constant 0 : i32
    return %c0_i32, %c0_i32_0 : i32, i32
  }
  func.func @transform_8(%arg0: i32) -> (i32, i32, i32) {
    %c0_i32 = arith.constant 0 : i32
    %c0_i32_0 = arith.constant 0 : i32
    %c0_i32_1 = arith.constant 0 : i32
    return %arg0, %c0_i32, %c0_i32_0 : i32, i32, i32
  }
}

module attributes {stable_mosaic.version = 11 : i64} {
  func.func @_attn_sublayer_kernel(%arg0: i32, %arg1: memref<1x8x32xf32, #tpu.memory_space<vmem>>, %arg2: memref<1x1x8xf32, #tpu.memory_space<vmem>>, %arg3: memref<1x32xf32, #tpu.memory_space<vmem>>, %arg4: memref<1x32xf32, #tpu.memory_space<vmem>>, %arg5: memref<32x96xbf16, #tpu.memory_space<vmem>>, %arg6: memref<1x96xf32, #tpu.memory_space<vmem>>, %arg7: memref<32x32xbf16, #tpu.memory_space<vmem>>, %arg8: memref<1x32xf32, #tpu.memory_space<vmem>>, %arg9: memref<1x8x32xf32, #tpu.memory_space<vmem>>, %arg10: memref<8x32xf32, #tpu.memory_space<vmem>>) attributes {dimension_semantics = [#tpu.dimension_semantics<parallel>], iteration_bounds = array<i64: 2>, scalar_prefetch = 0 : i64, scratch_operands = 1 : i64, tpu.core_type = #tpu.core_type<tc>, window_params = [{transform_indices = @transform_0, window_bounds = array<i64: 1, 8, 32>}, {transform_indices = @transform_1, window_bounds = array<i64: 1, 1, 8>}, {pipeline_mode = #tpu.pipeline_mode<synchronous>, transform_indices = @transform_2, window_bounds = array<i64: 1, 32>}, {pipeline_mode = #tpu.pipeline_mode<synchronous>, transform_indices = @transform_3, window_bounds = array<i64: 1, 32>}, {pipeline_mode = #tpu.pipeline_mode<synchronous>, transform_indices = @transform_4, window_bounds = array<i64: 32, 96>}, {pipeline_mode = #tpu.pipeline_mode<synchronous>, transform_indices = @transform_5, window_bounds = array<i64: 1, 96>}, {pipeline_mode = #tpu.pipeline_mode<synchronous>, transform_indices = @transform_6, window_bounds = array<i64: 32, 32>}, {pipeline_mode = #tpu.pipeline_mode<synchronous>, transform_indices = @transform_7, window_bounds = array<i64: 1, 32>}, {transform_indices = @transform_8, window_bounds = array<i64: 1, 8, 32>}]} {
    %c0 = arith.constant 0 : index
    %c0_0 = arith.constant 0 : index
    %c0_1 = arith.constant 0 : index
    %0 = vector.load %arg1[%c0, %c0_0, %c0_1] : memref<1x8x32xf32, #tpu.memory_space<vmem>>, vector<1x8x32xf32>
    %1 = vector.shape_cast %0 : vector<1x8x32xf32> to vector<8x32xf32>
    %c0_2 = arith.constant 0 : index
    %c0_3 = arith.constant 0 : index
    %2 = vector.load %arg3[%c0_2, %c0_3] : memref<1x32xf32, #tpu.memory_space<vmem>>, vector<1x32xf32>
    %c0_4 = arith.constant 0 : index
    %c0_5 = arith.constant 0 : index
    %3 = vector.load %arg4[%c0_4, %c0_5] : memref<1x32xf32, #tpu.memory_space<vmem>>, vector<1x32xf32>
    %cst = arith.constant dense<0.000000e+00> : vector<8xf32>
    %4 = vector.multi_reduction <add>, %1, %cst [1] : vector<8x32xf32> to vector<8xf32>
    %5 = vector.shape_cast %4 : vector<8xf32> to vector<8x1xf32>
    %cst_6 = arith.constant 3.200000e+01 : f32
    %6 = vector.broadcast %cst_6 : f32 to vector<8x1xf32>
    %7 = arith.divf %5, %6 : vector<8x1xf32>
    %8 = vector.broadcast %7 : vector<8x1xf32> to vector<8x32xf32>
    %9 = arith.subf %1, %8 : vector<8x32xf32>
    %10 = arith.mulf %9, %9 : vector<8x32xf32>
    %cst_7 = arith.constant dense<0.000000e+00> : vector<8xf32>
    %11 = vector.multi_reduction <add>, %10, %cst_7 [1] : vector<8x32xf32> to vector<8xf32>
    %12 = vector.shape_cast %11 : vector<8xf32> to vector<8x1xf32>
    %cst_8 = arith.constant 0.0322580636 : f32
    %13 = vector.broadcast %cst_8 : f32 to vector<8x1xf32>
    %14 = arith.mulf %12, %13 : vector<8x1xf32>
    %15 = math.sqrt %14 : vector<8x1xf32>
    %cst_9 = arith.constant 9.99999997E-7 : f32
    %16 = vector.broadcast %cst_9 : f32 to vector<8x1xf32>
    %17 = arith.addf %15, %16 : vector<8x1xf32>
    %18 = tpu.reciprocal %17 : vector<8x1xf32> -> vector<8x1xf32>
    %19 = vector.broadcast %7 : vector<8x1xf32> to vector<8x32xf32>
    %20 = arith.subf %1, %19 : vector<8x32xf32>
    %21 = vector.broadcast %2 : vector<1x32xf32> to vector<8x32xf32>
    %22 = arith.mulf %21, %20 : vector<8x32xf32>
    %23 = vector.broadcast %18 : vector<8x1xf32> to vector<8x32xf32>
    %24 = arith.mulf %22, %23 : vector<8x32xf32>
    %25 = vector.broadcast %3 : vector<1x32xf32> to vector<8x32xf32>
    %26 = arith.addf %24, %25 : vector<8x32xf32>
    %27 = arith.truncf %26 : vector<8x32xf32> to vector<8x32xbf16>
    %c0_10 = arith.constant 0 : index
    %c0_11 = arith.constant 0 : index
    %28 = vector.load %arg5[%c0_10, %c0_11] : memref<32x96xbf16, #tpu.memory_space<vmem>>, vector<32x96xbf16>
    %cst_12 = arith.constant dense<0.000000e+00> : vector<8x96xf32>
    %29 = tpu.matmul %27, %28, %cst_12 {dimension_numbers = #tpu.dot_dimension_numbers<[1], [0], [0], [1], [0, 0, 1, 1], [], []>} : vector<8x32xbf16>, vector<32x96xbf16>, vector<8x96xf32> -> vector<8x96xf32>
    %c0_13 = arith.constant 0 : index
    %c0_14 = arith.constant 0 : index
    %30 = vector.load %arg6[%c0_13, %c0_14] : memref<1x96xf32, #tpu.memory_space<vmem>>, vector<1x96xf32>
    %31 = vector.broadcast %30 : vector<1x96xf32> to vector<8x96xf32>
    %32 = arith.addf %29, %31 : vector<8x96xf32>
    %c0_15 = arith.constant 0 : index
    %c0_16 = arith.constant 0 : index
    %c0_17 = arith.constant 0 : index
    %33 = vector.load %arg2[%c0_15, %c0_16, %c0_17] : memref<1x1x8xf32, #tpu.memory_space<vmem>>, vector<1x1x8xf32>
    %34 = vector.shape_cast %33 : vector<1x1x8xf32> to vector<1x8xf32>
    %cst_18 = arith.constant 1.000000e+00 : f32
    %35 = vector.broadcast %cst_18 : f32 to vector<1x8xf32>
    %36 = arith.subf %34, %35 : vector<1x8xf32>
    %cst_19 = arith.constant 1.000000e+09 : f32
    %37 = vector.broadcast %cst_19 : f32 to vector<1x8xf32>
    %38 = arith.mulf %36, %37 : vector<1x8xf32>
    %39 = vector.extract_strided_slice %32 {offsets = [0, 0], sizes = [8, 8], strides = [1, 1]} : vector<8x96xf32> to vector<8x8xf32>
    %40 = arith.truncf %39 : vector<8x8xf32> to vector<8x8xbf16>
    %41 = vector.extract_strided_slice %32 {offsets = [0, 32], sizes = [8, 8], strides = [1, 1]} : vector<8x96xf32> to vector<8x8xf32>
    %42 = arith.truncf %41 : vector<8x8xf32> to vector<8x8xbf16>
    %43 = vector.extract_strided_slice %32 {offsets = [0, 64], sizes = [8, 8], strides = [1, 1]} : vector<8x96xf32> to vector<8x8xf32>
    %44 = arith.truncf %43 : vector<8x8xf32> to vector<8x8xbf16>
    %cst_20 = arith.constant dense<0.000000e+00> : vector<8x8xf32>
    %45 = tpu.matmul %40, %42, %cst_20 {dimension_numbers = #tpu.dot_dimension_numbers<[1], [1], [0], [0], [0, 0, 1, 0], [], []>} : vector<8x8xbf16>, vector<8x8xbf16>, vector<8x8xf32> -> vector<8x8xf32>
    %cst_21 = arith.constant 0.353553385 : f32
    %46 = vector.broadcast %cst_21 : f32 to vector<8x8xf32>
    %47 = arith.mulf %45, %46 : vector<8x8xf32>
    %48 = vector.broadcast %38 : vector<1x8xf32> to vector<8x8xf32>
    %49 = arith.addf %47, %48 : vector<8x8xf32>
    %cst_22 = arith.constant dense<0xFF800000> : vector<8xf32>
    %50 = vector.multi_reduction <maximumf>, %49, %cst_22 [1] : vector<8x8xf32> to vector<8xf32>
    %51 = vector.shape_cast %50 : vector<8xf32> to vector<8x1xf32>
    %52 = vector.broadcast %51 : vector<8x1xf32> to vector<8x8xf32>
    %53 = arith.subf %49, %52 : vector<8x8xf32>
    %54 = math.exp %53 : vector<8x8xf32>
    %cst_23 = arith.constant dense<0.000000e+00> : vector<8xf32>
    %55 = vector.multi_reduction <add>, %54, %cst_23 [1] : vector<8x8xf32> to vector<8xf32>
    %56 = vector.shape_cast %55 : vector<8xf32> to vector<8x1xf32>
    %57 = arith.truncf %54 : vector<8x8xf32> to vector<8x8xbf16>
    %cst_24 = arith.constant dense<0.000000e+00> : vector<8x8xf32>
    %58 = tpu.matmul %57, %44, %cst_24 {dimension_numbers = #tpu.dot_dimension_numbers<[1], [0], [0], [1], [0, 0, 1, 1], [], []>} : vector<8x8xbf16>, vector<8x8xbf16>, vector<8x8xf32> -> vector<8x8xf32>
    %59 = tpu.reciprocal %56 : vector<8x1xf32> -> vector<8x1xf32>
    %60 = vector.broadcast %59 : vector<8x1xf32> to vector<8x8xf32>
    %61 = arith.mulf %58, %60 : vector<8x8xf32>
    %c0_25 = arith.constant 0 : index
    %c0_26 = arith.constant 0 : index
    %62 = vector.load %arg10[%c0_25, %c0_26] : memref<8x32xf32, #tpu.memory_space<vmem>>, vector<8x8xf32>
    tpu.vector_store %arg10[%c0_25, %c0_26], %61 {strides = array<i32>} : memref<8x32xf32, #tpu.memory_space<vmem>>, vector<8x8xf32>,
    %63 = vector.extract_strided_slice %32 {offsets = [0, 8], sizes = [8, 8], strides = [1, 1]} : vector<8x96xf32> to vector<8x8xf32>
    %64 = arith.truncf %63 : vector<8x8xf32> to vector<8x8xbf16>
    %65 = vector.extract_strided_slice %32 {offsets = [0, 40], sizes = [8, 8], strides = [1, 1]} : vector<8x96xf32> to vector<8x8xf32>
    %66 = arith.truncf %65 : vector<8x8xf32> to vector<8x8xbf16>
    %67 = vector.extract_strided_slice %32 {offsets = [0, 72], sizes = [8, 8], strides = [1, 1]} : vector<8x96xf32> to vector<8x8xf32>
    %68 = arith.truncf %67 : vector<8x8xf32> to vector<8x8xbf16>
    %cst_27 = arith.constant dense<0.000000e+00> : vector<8x8xf32>
    %69 = tpu.matmul %64, %66, %cst_27 {dimension_numbers = #tpu.dot_dimension_numbers<[1], [1], [0], [0], [0, 0, 1, 0], [], []>} : vector<8x8xbf16>, vector<8x8xbf16>, vector<8x8xf32> -> vector<8x8xf32>
    %cst_28 = arith.constant 0.353553385 : f32
    %70 = vector.broadcast %cst_28 : f32 to vector<8x8xf32>
    %71 = arith.mulf %69, %70 : vector<8x8xf32>
    %72 = vector.broadcast %38 : vector<1x8xf32> to vector<8x8xf32>
    %73 = arith.addf %71, %72 : vector<8x8xf32>
    %cst_29 = arith.constant dense<0xFF800000> : vector<8xf32>
    %74 = vector.multi_reduction <maximumf>, %73, %cst_29 [1] : vector<8x8xf32> to vector<8xf32>
    %75 = vector.shape_cast %74 : vector<8xf32> to vector<8x1xf32>
    %76 = vector.broadcast %75 : vector<8x1xf32> to vector<8x8xf32>
    %77 = arith.subf %73, %76 : vector<8x8xf32>
    %78 = math.exp %77 : vector<8x8xf32>
    %cst_30 = arith.constant dense<0.000000e+00> : vector<8xf32>
    %79 = vector.multi_reduction <add>, %78, %cst_30 [1] : vector<8x8xf32> to vector<8xf32>
    %80 = vector.shape_cast %79 : vector<8xf32> to vector<8x1xf32>
    %81 = arith.truncf %78 : vector<8x8xf32> to vector<8x8xbf16>
    %cst_31 = arith.constant dense<0.000000e+00> : vector<8x8xf32>
    %82 = tpu.matmul %81, %68, %cst_31 {dimension_numbers = #tpu.dot_dimension_numbers<[1], [0], [0], [1], [0, 0, 1, 1], [], []>} : vector<8x8xbf16>, vector<8x8xbf16>, vector<8x8xf32> -> vector<8x8xf32>
    %83 = tpu.reciprocal %80 : vector<8x1xf32> -> vector<8x1xf32>
    %84 = vector.broadcast %83 : vector<8x1xf32> to vector<8x8xf32>
    %85 = arith.mulf %82, %84 : vector<8x8xf32>
    %c0_32 = arith.constant 0 : index
    %c8 = arith.constant 8 : index
    %86 = vector.load %arg10[%c0_32, %c8] : memref<8x32xf32, #tpu.memory_space<vmem>>, vector<8x8xf32>
    tpu.vector_store %arg10[%c0_32, %c8], %85 {strides = array<i32>} : memref<8x32xf32, #tpu.memory_space<vmem>>, vector<8x8xf32>,
    %87 = vector.extract_strided_slice %32 {offsets = [0, 16], sizes = [8, 8], strides = [1, 1]} : vector<8x96xf32> to vector<8x8xf32>
    %88 = arith.truncf %87 : vector<8x8xf32> to vector<8x8xbf16>
    %89 = vector.extract_strided_slice %32 {offsets = [0, 48], sizes = [8, 8], strides = [1, 1]} : vector<8x96xf32> to vector<8x8xf32>
    %90 = arith.truncf %89 : vector<8x8xf32> to vector<8x8xbf16>
    %91 = vector.extract_strided_slice %32 {offsets = [0, 80], sizes = [8, 8], strides = [1, 1]} : vector<8x96xf32> to vector<8x8xf32>
    %92 = arith.truncf %91 : vector<8x8xf32> to vector<8x8xbf16>
    %cst_33 = arith.constant dense<0.000000e+00> : vector<8x8xf32>
    %93 = tpu.matmul %88, %90, %cst_33 {dimension_numbers = #tpu.dot_dimension_numbers<[1], [1], [0], [0], [0, 0, 1, 0], [], []>} : vector<8x8xbf16>, vector<8x8xbf16>, vector<8x8xf32> -> vector<8x8xf32>
    %cst_34 = arith.constant 0.353553385 : f32
    %94 = vector.broadcast %cst_34 : f32 to vector<8x8xf32>
    %95 = arith.mulf %93, %94 : vector<8x8xf32>
    %96 = vector.broadcast %38 : vector<1x8xf32> to vector<8x8xf32>
    %97 = arith.addf %95, %96 : vector<8x8xf32>
    %cst_35 = arith.constant dense<0xFF800000> : vector<8xf32>
    %98 = vector.multi_reduction <maximumf>, %97, %cst_35 [1] : vector<8x8xf32> to vector<8xf32>
    %99 = vector.shape_cast %98 : vector<8xf32> to vector<8x1xf32>
    %100 = vector.broadcast %99 : vector<8x1xf32> to vector<8x8xf32>
    %101 = arith.subf %97, %100 : vector<8x8xf32>
    %102 = math.exp %101 : vector<8x8xf32>
    %cst_36 = arith.constant dense<0.000000e+00> : vector<8xf32>
    %103 = vector.multi_reduction <add>, %102, %cst_36 [1] : vector<8x8xf32> to vector<8xf32>
    %104 = vector.shape_cast %103 : vector<8xf32> to vector<8x1xf32>
    %105 = arith.truncf %102 : vector<8x8xf32> to vector<8x8xbf16>
    %cst_37 = arith.constant dense<0.000000e+00> : vector<8x8xf32>
    %106 = tpu.matmul %105, %92, %cst_37 {dimension_numbers = #tpu.dot_dimension_numbers<[1], [0], [0], [1], [0, 0, 1, 1], [], []>} : vector<8x8xbf16>, vector<8x8xbf16>, vector<8x8xf32> -> vector<8x8xf32>
    %107 = tpu.reciprocal %104 : vector<8x1xf32> -> vector<8x1xf32>
    %108 = vector.broadcast %107 : vector<8x1xf32> to vector<8x8xf32>
    %109 = arith.mulf %106, %108 : vector<8x8xf32>
    %c0_38 = arith.constant 0 : index
    %c16 = arith.constant 16 : index
    %110 = vector.load %arg10[%c0_38, %c16] : memref<8x32xf32, #tpu.memory_space<vmem>>, vector<8x8xf32>
    tpu.vector_store %arg10[%c0_38, %c16], %109 {strides = array<i32>} : memref<8x32xf32, #tpu.memory_space<vmem>>, vector<8x8xf32>,
    %111 = vector.extract_strided_slice %32 {offsets = [0, 24], sizes = [8, 8], strides = [1, 1]} : vector<8x96xf32> to vector<8x8xf32>
    %112 = arith.truncf %111 : vector<8x8xf32> to vector<8x8xbf16>
    %113 = vector.extract_strided_slice %32 {offsets = [0, 56], sizes = [8, 8], strides = [1, 1]} : vector<8x96xf32> to vector<8x8xf32>
    %114 = arith.truncf %113 : vector<8x8xf32> to vector<8x8xbf16>
    %115 = vector.extract_strided_slice %32 {offsets = [0, 88], sizes = [8, 8], strides = [1, 1]} : vector<8x96xf32> to vector<8x8xf32>
    %116 = arith.truncf %115 : vector<8x8xf32> to vector<8x8xbf16>
    %cst_39 = arith.constant dense<0.000000e+00> : vector<8x8xf32>
    %117 = tpu.matmul %112, %114, %cst_39 {dimension_numbers = #tpu.dot_dimension_numbers<[1], [1], [0], [0], [0, 0, 1, 0], [], []>} : vector<8x8xbf16>, vector<8x8xbf16>, vector<8x8xf32> -> vector<8x8xf32>
    %cst_40 = arith.constant 0.353553385 : f32
    %118 = vector.broadcast %cst_40 : f32 to vector<8x8xf32>
    %119 = arith.mulf %117, %118 : vector<8x8xf32>
    %120 = vector.broadcast %38 : vector<1x8xf32> to vector<8x8xf32>
    %121 = arith.addf %119, %120 : vector<8x8xf32>
    %cst_41 = arith.constant dense<0xFF800000> : vector<8xf32>
    %122 = vector.multi_reduction <maximumf>, %121, %cst_41 [1] : vector<8x8xf32> to vector<8xf32>
    %123 = vector.shape_cast %122 : vector<8xf32> to vector<8x1xf32>
    %124 = vector.broadcast %123 : vector<8x1xf32> to vector<8x8xf32>
    %125 = arith.subf %121, %124 : vector<8x8xf32>
    %126 = math.exp %125 : vector<8x8xf32>
    %cst_42 = arith.constant dense<0.000000e+00> : vector<8xf32>
    %127 = vector.multi_reduction <add>, %126, %cst_42 [1] : vector<8x8xf32> to vector<8xf32>
    %128 = vector.shape_cast %127 : vector<8xf32> to vector<8x1xf32>
    %129 = arith.truncf %126 : vector<8x8xf32> to vector<8x8xbf16>
    %cst_43 = arith.constant dense<0.000000e+00> : vector<8x8xf32>
    %130 = tpu.matmul %129, %116, %cst_43 {dimension_numbers = #tpu.dot_dimension_numbers<[1], [0], [0], [1], [0, 0, 1, 1], [], []>} : vector<8x8xbf16>, vector<8x8xbf16>, vector<8x8xf32> -> vector<8x8xf32>
    %131 = tpu.reciprocal %128 : vector<8x1xf32> -> vector<8x1xf32>
    %132 = vector.broadcast %131 : vector<8x1xf32> to vector<8x8xf32>
    %133 = arith.mulf %130, %132 : vector<8x8xf32>
    %c0_44 = arith.constant 0 : index
    %c24 = arith.constant 24 : index
    %134 = vector.load %arg10[%c0_44, %c24] : memref<8x32xf32, #tpu.memory_space<vmem>>, vector<8x8xf32>
    tpu.vector_store %arg10[%c0_44, %c24], %133 {strides = array<i32>} : memref<8x32xf32, #tpu.memory_space<vmem>>, vector<8x8xf32>,
    %c0_45 = arith.constant 0 : index
    %c0_46 = arith.constant 0 : index
    %135 = vector.load %arg8[%c0_45, %c0_46] : memref<1x32xf32, #tpu.memory_space<vmem>>, vector<1x32xf32>
    %136 = vector.broadcast %135 : vector<1x32xf32> to vector<8x32xf32>
    %137 = arith.addf %1, %136 : vector<8x32xf32>
    %c0_47 = arith.constant 0 : index
    %c0_48 = arith.constant 0 : index
    %138 = vector.load %arg10[%c0_47, %c0_48] : memref<8x32xf32, #tpu.memory_space<vmem>>, vector<8x32xf32>
    %139 = arith.truncf %138 : vector<8x32xf32> to vector<8x32xbf16>
    %c0_49 = arith.constant 0 : index
    %c0_50 = arith.constant 0 : index
    %140 = vector.load %arg7[%c0_49, %c0_50] : memref<32x32xbf16, #tpu.memory_space<vmem>>, vector<32x32xbf16>
    %cst_51 = arith.constant dense<0.000000e+00> : vector<8x32xf32>
    %141 = tpu.matmul %139, %140, %cst_51 {dimension_numbers = #tpu.dot_dimension_numbers<[1], [0], [0], [1], [0, 0, 1, 1], [], []>} : vector<8x32xbf16>, vector<32x32xbf16>, vector<8x32xf32> -> vector<8x32xf32>
    %142 = arith.addf %137, %141 : vector<8x32xf32>
    %c0_52 = arith.constant 0 : index
    %c0_53 = arith.constant 0 : index
    %c0_54 = arith.constant 0 : index
    %143 = vector.load %arg9[%c0_52, %c0_53, %c0_54] : memref<1x8x32xf32, #tpu.memory_space<vmem>>, vector<1x8x32xf32>
    %144 = vector.shape_cast %143 : vector<1x8x32xf32> to vector<8x32xf32>
    %145 = vector.shape_cast %142 : vector<8x32xf32> to vector<1x8x32xf32>
    tpu.vector_store %arg9[%c0_52, %c0_53, %c0_54], %145 {strides = array<i32>} : memref<1x8x32xf32, #tpu.memory_space<vmem>>, vector<1x8x32xf32>,
    return
  }
  func.func @transform_0(%arg0: i32) -> (i32, i32, i32) {
    %c0_i32 = arith.constant 0 : i32
    %c0_i32_0 = arith.constant 0 : i32
    %c0_i32_1 = arith.constant 0 : i32
    return %arg0, %c0_i32, %c0_i32_0 : i32, i32, i32
  }
  func.func @transform_1(%arg0: i32) -> (i32, i32, i32) {
    %c0_i32 = arith.constant 0 : i32
    %c0_i32_0 = arith.constant 0 : i32
    %c0_i32_1 = arith.constant 0 : i32
    return %arg0, %c0_i32, %c0_i32_0 : i32, i32, i32
  }
  func.func @transform_2(%arg0: i32) -> (i32, i32) {
    %c0_i32 = arith.constant 0 : i32
    %c0_i32_0 = arith.constant 0 : i32
    %c0_i32_1 = arith.constant 0 : i32
    return %c0_i32, %c0_i32_0 : i32, i32
  }
  func.func @transform_3(%arg0: i32) -> (i32, i32) {
    %c0_i32 = arith.constant 0 : i32
    %c0_i32_0 = arith.constant 0 : i32
    %c0_i32_1 = arith.constant 0 : i32
    return %c0_i32, %c0_i32_0 : i32, i32
  }
  func.func @transform_4(%arg0: i32) -> (i32, i32) {
    %c0_i32 = arith.constant 0 : i32
    %c0_i32_0 = arith.constant 0 : i32
    %c0_i32_1 = arith.constant 0 : i32
    return %c0_i32, %c0_i32_0 : i32, i32
  }
  func.func @transform_5(%arg0: i32) -> (i32, i32) {
    %c0_i32 = arith.constant 0 : i32
    %c0_i32_0 = arith.constant 0 : i32
    %c0_i32_1 = arith.constant 0 : i32
    return %c0_i32, %c0_i32_0 : i32, i32
  }
  func.func @transform_6(%arg0: i32) -> (i32, i32) {
    %c0_i32 = arith.constant 0 : i32
    %c0_i32_0 = arith.constant 0 : i32
    %c0_i32_1 = arith.constant 0 : i32
    return %c0_i32, %c0_i32_0 : i32, i32
  }
  func.func @transform_7(%arg0: i32) -> (i32, i32) {
    %c0_i32 = arith.constant 0 : i32
    %c0_i32_0 = arith.constant 0 : i32
    %c0_i32_1 = arith.constant 0 : i32
    return %c0_i32, %c0_i32_0 : i32, i32
  }
  func.func @transform_8(%arg0: i32) -> (i32, i32, i32) {
    %c0_i32 = arith.constant 0 : i32
    %c0_i32_0 = arith.constant 0 : i32
    %c0_i32_1 = arith.constant 0 : i32
    return %arg0, %c0_i32, %c0_i32_0 : i32, i32, i32
  }
}

module attributes {stable_mosaic.version = 11 : i64} {
  func.func @_ffn_sublayer_kernel(%arg0: i32, %arg1: memref<16x32xf32, #tpu.memory_space<vmem>>, %arg2: memref<1x32xf32, #tpu.memory_space<vmem>>, %arg3: memref<1x32xf32, #tpu.memory_space<vmem>>, %arg4: memref<32x64xbf16, #tpu.memory_space<vmem>>, %arg5: memref<1x64xf32, #tpu.memory_space<vmem>>, %arg6: memref<64x32xbf16, #tpu.memory_space<vmem>>, %arg7: memref<1x32xf32, #tpu.memory_space<vmem>>, %arg8: memref<1x32xf32, #tpu.memory_space<vmem>>, %arg9: memref<1x32xf32, #tpu.memory_space<vmem>>, %arg10: memref<16x32xf32, #tpu.memory_space<vmem>>) attributes {dimension_semantics = [#tpu.dimension_semantics<parallel>], iteration_bounds = array<i64: 1>, scalar_prefetch = 0 : i64, scratch_operands = 0 : i64, tpu.core_type = #tpu.core_type<tc>, window_params = [{transform_indices = @transform_0, window_bounds = array<i64: 16, 32>}, {pipeline_mode = #tpu.pipeline_mode<synchronous>, transform_indices = @transform_1, window_bounds = array<i64: 1, 32>}, {pipeline_mode = #tpu.pipeline_mode<synchronous>, transform_indices = @transform_2, window_bounds = array<i64: 1, 32>}, {pipeline_mode = #tpu.pipeline_mode<synchronous>, transform_indices = @transform_3, window_bounds = array<i64: 32, 64>}, {pipeline_mode = #tpu.pipeline_mode<synchronous>, transform_indices = @transform_4, window_bounds = array<i64: 1, 64>}, {pipeline_mode = #tpu.pipeline_mode<synchronous>, transform_indices = @transform_5, window_bounds = array<i64: 64, 32>}, {pipeline_mode = #tpu.pipeline_mode<synchronous>, transform_indices = @transform_6, window_bounds = array<i64: 1, 32>}, {pipeline_mode = #tpu.pipeline_mode<synchronous>, transform_indices = @transform_7, window_bounds = array<i64: 1, 32>}, {pipeline_mode = #tpu.pipeline_mode<synchronous>, transform_indices = @transform_8, window_bounds = array<i64: 1, 32>}, {transform_indices = @transform_9, window_bounds = array<i64: 16, 32>}]} {
    %c0 = arith.constant 0 : index
    %c0_0 = arith.constant 0 : index
    %0 = vector.load %arg1[%c0, %c0_0] : memref<16x32xf32, #tpu.memory_space<vmem>>, vector<16x32xf32>
    %c0_1 = arith.constant 0 : index
    %c0_2 = arith.constant 0 : index
    %1 = vector.load %arg2[%c0_1, %c0_2] : memref<1x32xf32, #tpu.memory_space<vmem>>, vector<1x32xf32>
    %c0_3 = arith.constant 0 : index
    %c0_4 = arith.constant 0 : index
    %2 = vector.load %arg3[%c0_3, %c0_4] : memref<1x32xf32, #tpu.memory_space<vmem>>, vector<1x32xf32>
    %cst = arith.constant dense<0.000000e+00> : vector<16xf32>
    %3 = vector.multi_reduction <add>, %0, %cst [1] : vector<16x32xf32> to vector<16xf32>
    %4 = vector.shape_cast %3 : vector<16xf32> to vector<16x1xf32>
    %cst_5 = arith.constant 3.200000e+01 : f32
    %5 = vector.broadcast %cst_5 : f32 to vector<16x1xf32>
    %6 = arith.divf %4, %5 : vector<16x1xf32>
    %7 = vector.broadcast %6 : vector<16x1xf32> to vector<16x32xf32>
    %8 = arith.subf %0, %7 : vector<16x32xf32>
    %9 = arith.mulf %8, %8 : vector<16x32xf32>
    %cst_6 = arith.constant dense<0.000000e+00> : vector<16xf32>
    %10 = vector.multi_reduction <add>, %9, %cst_6 [1] : vector<16x32xf32> to vector<16xf32>
    %11 = vector.shape_cast %10 : vector<16xf32> to vector<16x1xf32>
    %cst_7 = arith.constant 0.0322580636 : f32
    %12 = vector.broadcast %cst_7 : f32 to vector<16x1xf32>
    %13 = arith.mulf %11, %12 : vector<16x1xf32>
    %14 = math.sqrt %13 : vector<16x1xf32>
    %cst_8 = arith.constant 9.99999997E-7 : f32
    %15 = vector.broadcast %cst_8 : f32 to vector<16x1xf32>
    %16 = arith.addf %14, %15 : vector<16x1xf32>
    %17 = tpu.reciprocal %16 : vector<16x1xf32> -> vector<16x1xf32>
    %18 = vector.broadcast %6 : vector<16x1xf32> to vector<16x32xf32>
    %19 = arith.subf %0, %18 : vector<16x32xf32>
    %20 = vector.broadcast %1 : vector<1x32xf32> to vector<16x32xf32>
    %21 = arith.mulf %20, %19 : vector<16x32xf32>
    %22 = vector.broadcast %17 : vector<16x1xf32> to vector<16x32xf32>
    %23 = arith.mulf %21, %22 : vector<16x32xf32>
    %24 = vector.broadcast %2 : vector<1x32xf32> to vector<16x32xf32>
    %25 = arith.addf %23, %24 : vector<16x32xf32>
    %26 = arith.truncf %25 : vector<16x32xf32> to vector<16x32xbf16>
    %c0_9 = arith.constant 0 : index
    %c0_10 = arith.constant 0 : index
    %27 = vector.load %arg4[%c0_9, %c0_10] : memref<32x64xbf16, #tpu.memory_space<vmem>>, vector<32x64xbf16>
    %cst_11 = arith.constant dense<0.000000e+00> : vector<16x64xf32>
    %28 = tpu.matmul %26, %27, %cst_11 {dimension_numbers = #tpu.dot_dimension_numbers<[1], [0], [0], [1], [0, 0, 1, 1], [], []>} : vector<16x32xbf16>, vector<32x64xbf16>, vector<16x64xf32> -> vector<16x64xf32>
    %c0_12 = arith.constant 0 : index
    %c0_13 = arith.constant 0 : index
    %29 = vector.load %arg5[%c0_12, %c0_13] : memref<1x64xf32, #tpu.memory_space<vmem>>, vector<1x64xf32>
    %30 = vector.broadcast %29 : vector<1x64xf32> to vector<16x64xf32>
    %31 = arith.addf %28, %30 : vector<16x64xf32>
    %cst_14 = arith.constant 0.000000e+00 : f32
    %32 = vector.broadcast %cst_14 : f32 to vector<16x64xf32>
    %33 = arith.maximumf %31, %32 : vector<16x64xf32>
    %34 = arith.truncf %33 : vector<16x64xf32> to vector<16x64xbf16>
    %c0_15 = arith.constant 0 : index
    %c0_16 = arith.constant 0 : index
    %35 = vector.load %arg6[%c0_15, %c0_16] : memref<64x32xbf16, #tpu.memory_space<vmem>>, vector<64x32xbf16>
    %cst_17 = arith.constant dense<0.000000e+00> : vector<16x32xf32>
    %36 = tpu.matmul %34, %35, %cst_17 {dimension_numbers = #tpu.dot_dimension_numbers<[1], [0], [0], [1], [0, 0, 1, 1], [], []>} : vector<16x64xbf16>, vector<64x32xbf16>, vector<16x32xf32> -> vector<16x32xf32>
    %c0_18 = arith.constant 0 : index
    %c0_19 = arith.constant 0 : index
    %37 = vector.load %arg7[%c0_18, %c0_19] : memref<1x32xf32, #tpu.memory_space<vmem>>, vector<1x32xf32>
    %38 = vector.broadcast %37 : vector<1x32xf32> to vector<16x32xf32>
    %39 = arith.addf %36, %38 : vector<16x32xf32>
    %40 = arith.addf %0, %39 : vector<16x32xf32>
    %c0_20 = arith.constant 0 : index
    %c0_21 = arith.constant 0 : index
    %41 = vector.load %arg8[%c0_20, %c0_21] : memref<1x32xf32, #tpu.memory_space<vmem>>, vector<1x32xf32>
    %c0_22 = arith.constant 0 : index
    %c0_23 = arith.constant 0 : index
    %42 = vector.load %arg9[%c0_22, %c0_23] : memref<1x32xf32, #tpu.memory_space<vmem>>, vector<1x32xf32>
    %cst_24 = arith.constant dense<0.000000e+00> : vector<16xf32>
    %43 = vector.multi_reduction <add>, %40, %cst_24 [1] : vector<16x32xf32> to vector<16xf32>
    %44 = vector.shape_cast %43 : vector<16xf32> to vector<16x1xf32>
    %cst_25 = arith.constant 3.200000e+01 : f32
    %45 = vector.broadcast %cst_25 : f32 to vector<16x1xf32>
    %46 = arith.divf %44, %45 : vector<16x1xf32>
    %47 = vector.broadcast %46 : vector<16x1xf32> to vector<16x32xf32>
    %48 = arith.subf %40, %47 : vector<16x32xf32>
    %49 = arith.mulf %48, %48 : vector<16x32xf32>
    %cst_26 = arith.constant dense<0.000000e+00> : vector<16xf32>
    %50 = vector.multi_reduction <add>, %49, %cst_26 [1] : vector<16x32xf32> to vector<16xf32>
    %51 = vector.shape_cast %50 : vector<16xf32> to vector<16x1xf32>
    %cst_27 = arith.constant 0.0322580636 : f32
    %52 = vector.broadcast %cst_27 : f32 to vector<16x1xf32>
    %53 = arith.mulf %51, %52 : vector<16x1xf32>
    %54 = math.sqrt %53 : vector<16x1xf32>
    %cst_28 = arith.constant 9.99999997E-7 : f32
    %55 = vector.broadcast %cst_28 : f32 to vector<16x1xf32>
    %56 = arith.addf %54, %55 : vector<16x1xf32>
    %57 = tpu.reciprocal %56 : vector<16x1xf32> -> vector<16x1xf32>
    %58 = vector.broadcast %46 : vector<16x1xf32> to vector<16x32xf32>
    %59 = arith.subf %40, %58 : vector<16x32xf32>
    %60 = vector.broadcast %41 : vector<1x32xf32> to vector<16x32xf32>
    %61 = arith.mulf %60, %59 : vector<16x32xf32>
    %62 = vector.broadcast %57 : vector<16x1xf32> to vector<16x32xf32>
    %63 = arith.mulf %61, %62 : vector<16x32xf32>
    %64 = vector.broadcast %42 : vector<1x32xf32> to vector<16x32xf32>
    %65 = arith.addf %63, %64 : vector<16x32xf32>
    %c0_29 = arith.constant 0 : index
    %c0_30 = arith.constant 0 : index
    %66 = vector.load %arg10[%c0_29, %c0_30] : memref<16x32xf32, #tpu.memory_space<vmem>>, vector<16x32xf32>
    tpu.vector_store %arg10[%c0_29, %c0_30], %65 {strides = array<i32>} : memref<16x32xf32, #tpu.memory_space<vmem>>, vector<16x32xf32>,
    return
  }
  func.func @transform_0(%arg0: i32) -> (i32, i32) {
    %c0_i32 = arith.constant 0 : i32
    %c0_i32_0 = arith.constant 0 : i32
    return %arg0, %c0_i32 : i32, i32
  }
  func.func @transform_1(%arg0: i32) -> (i32, i32) {
    %c0_i32 = arith.constant 0 : i32
    %c0_i32_0 = arith.constant 0 : i32
    %c0_i32_1 = arith.constant 0 : i32
    return %c0_i32, %c0_i32_0 : i32, i32
  }
  func.func @transform_2(%arg0: i32) -> (i32, i32) {
    %c0_i32 = arith.constant 0 : i32
    %c0_i32_0 = arith.constant 0 : i32
    %c0_i32_1 = arith.constant 0 : i32
    return %c0_i32, %c0_i32_0 : i32, i32
  }
  func.func @transform_3(%arg0: i32) -> (i32, i32) {
    %c0_i32 = arith.constant 0 : i32
    %c0_i32_0 = arith.constant 0 : i32
    %c0_i32_1 = arith.constant 0 : i32
    return %c0_i32, %c0_i32_0 : i32, i32
  }
  func.func @transform_4(%arg0: i32) -> (i32, i32) {
    %c0_i32 = arith.constant 0 : i32
    %c0_i32_0 = arith.constant 0 : i32
    %c0_i32_1 = arith.constant 0 : i32
    return %c0_i32, %c0_i32_0 : i32, i32
  }
  func.func @transform_5(%arg0: i32) -> (i32, i32) {
    %c0_i32 = arith.constant 0 : i32
    %c0_i32_0 = arith.constant 0 : i32
    %c0_i32_1 = arith.constant 0 : i32
    return %c0_i32, %c0_i32_0 : i32, i32
  }
  func.func @transform_6(%arg0: i32) -> (i32, i32) {
    %c0_i32 = arith.constant 0 : i32
    %c0_i32_0 = arith.constant 0 : i32
    %c0_i32_1 = arith.constant 0 : i32
    return %c0_i32, %c0_i32_0 : i32, i32
  }
  func.func @transform_7(%arg0: i32) -> (i32, i32) {
    %c0_i32 = arith.constant 0 : i32
    %c0_i32_0 = arith.constant 0 : i32
    %c0_i32_1 = arith.constant 0 : i32
    return %c0_i32, %c0_i32_0 : i32, i32
  }
  func.func @transform_8(%arg0: i32) -> (i32, i32) {
    %c0_i32 = arith.constant 0 : i32
    %c0_i32_0 = arith.constant 0 : i32
    %c0_i32_1 = arith.constant 0 : i32
    return %c0_i32, %c0_i32_0 : i32, i32
  }
  func.func @transform_9(%arg0: i32) -> (i32, i32) {
    %c0_i32 = arith.constant 0 : i32
    %c0_i32_0 = arith.constant 0 : i32
    return %arg0, %c0_i32 : i32, i32
  }
}

</mosaic_0001>

<bundles_post_ra>
// kernel: encoder_forward.5
= control target key start
LH: loop header
LB: loop body
LE: loop exit
PB: predicated region body
PF: predicated region fallthrough
CT: control target
= control target key end

     0   :  { %vm37_vm0 = vcmask 261120   ;;  %v314_v14 = vmov 0.0   ;;  %vm315_vm1 = vmmov 0   ;;  %vm205_vm6 = vcmask 523264   ;;  %s425_s0 = inlined_call_operand.vmem [shape: f32[16,32], index: 0, kind: input, shape index: {}]   ;;  %s426_s7 = inlined_call_operand.vmem [shape: f32[1,32], index: 7, kind: input, shape index: {}]   ;;  %s427_s8 = inlined_call_operand.vmem [shape: f32[1,32], index: 8, kind: input, shape index: {}]   ;;  %s428_s3 = inlined_call_operand.vmem [shape: bf16[32,64], index: 3, kind: input, shape index: {}]   ;;  %s429_s5 = inlined_call_operand.vmem [shape: bf16[64,32], index: 5, kind: input, shape index: {}]   ;;  %s430_s1 = inlined_call_operand.vmem [shape: f32[1,32], index: 1, kind: input, shape index: {}]   ;;  %s431_s2 = inlined_call_operand.vmem [shape: f32[1,32], index: 2, kind: input, shape index: {}]   ;;  %s432_s4 = inlined_call_operand.vmem [shape: f32[1,64], index: 4, kind: input, shape index: {}]   ;;  %s433_s6 = inlined_call_operand.vmem [shape: f32[1,32], index: 6, kind: input, shape index: {}]   ;;  %s434_s9 = inlined_call_operand.vmem [shape: f32[16,32], index: 9, kind: output, shape index: {}]  }
   0x1   :  { %v369_v0 = vld [vmem:[%s425_s0] sm:$0xff]  ;;  %v374_v1 = vld [vmem:[%s425_s0 + $0x8] sm:$0xff]  ;;  %278 = vmatprep.subr.bf16.mxu0 %v314_v14  ;;  %282 = vmatprep.mubr.msk.bf16.mxu0 %vm315_vm1, %v314_v14  ;;  %v302_v17 = vld [vmem:[%s429_s5 + $0x18] sm:$0xff]  }
   0x2   :  { %v38_v2 = vsel %vm37_vm0, %v369_v0, 0.0  ;;  %v41_v3 = vsel %vm37_vm0, %v374_v1, 0.0  ;;  %v300_v15 = vld [vmem:[%s428_s3 + $0x8] sm:$0xff]   ;;  %286 = vmatprep.subr.bf16.mxu1 %v314_v14  ;;  %294 = vmatprep.mubr.msk.bf16.mxu1 %vm315_vm1, %v314_v14  ;;  %v301_v16 = vld [vmem:[%s428_s3] sm:$0xff]   ;;  %v303_v45 = vld [vmem:[%s429_s5 + $0x10] sm:$0xff]  }
   0x3   :  { %39 = vadd.xlane.f32.xlu0 %v38_v2  ;;  %279 = vmatpush3.bf16.msra.mxu0 %v300_v15  ;;  %v258_v34 = vld [vmem:[%s430_s1] ss:$0 sm:$0xff]  ;;  %v304_v46 = vld [vmem:[%s429_s5 + $0x8] sm:$0xff]  }
   0x4   :  { %280 = vmatprep.subr.bf16.mxu0 %v314_v14  ;;  %287 = vmatpush3.bf16.msra.mxu1 %v302_v17  ;;  %v259_v40 = vld [vmem:[%s431_s2] ss:$0 sm:$0xff] }
   0x5   :  { %288 = vmatprep.subr.bf16.mxu1 %v314_v14  ;;  %v305_v47 = vld [vmem:[%s429_s5] sm:$0xff]  }
   0x6   :  { %v260_v48 = vld [vmem:[%s432_s4] ss:$0 sm:$0xff] }
   0x7   :  { %42 = vadd.xlane.f32.xlu0 %v41_v3  ;;  %281 = vmatpush3.bf16.msra.mxu0 %v301_v16  ;;  %v264_v58 = vld [vmem:[%s433_s6] ss:$0 sm:$0xff] }
   0x8   :  { %289 = vmatpush3.bf16.msra.mxu1 %v303_v45 }
   0x9   :  { %290 = vmatprep.subr.bf16.mxu1 %v314_v14 }
   0xc   :  { %291 = vmatpush3.bf16.msra.mxu1 %v304_v46 }
   0xd   :  { %292 = vmatprep.subr.bf16.mxu1 %v314_v14 }
  0x10   :  { %293 = vmatpush3.bf16.msra.mxu1 %v305_v47 }
  0x8c   :  { %v40_v4 = vpop.xlane.xlu0 %39 }
  0x8d   :  { %v45_v5 = vmul.f32 0.03125, %v40_v4 }
  0x8f   :  { %v47_v6 = vsub.f32 %v369_v0, %v45_v5 }
  0x90   :  { %v43_v7 = vpop.xlane.xlu0 %42 }
  0x91   :  { %v46_v8 = vmul.f32 0.03125, %v43_v7  ;;  %v49_v9 = vmul.f32 %v47_v6, %v47_v6  ;;  %v83_v36 = vmul.f32 %v258_v34, %v47_v6 }
  0x93   :  { %v48_v10 = vsub.f32 %v374_v1, %v46_v8  ;;  %v51_v11 = vsel %vm37_vm0, %v49_v9, 0.0 }
  0x94   :  { %52 = vadd.xlane.f32.xlu1 %v51_v11 }
  0x95   :  { %v50_v12 = vmul.f32 %v48_v10, %v48_v10  ;;  %v84_v37 = vmul.f32 %v258_v34, %v48_v10 }
  0x97   :  { %v54_v13 = vsel %vm37_vm0, %v50_v12, 0.0 }
  0x98   :  { %55 = vadd.xlane.f32.xlu1 %v54_v13 }
 0x11d   :  { %v53_v18 = vpop.xlane.xlu1 %52 }
 0x11e   :  { %v57_v19 = vmul.f32 0.032258064, %v53_v18 }
 0x120   :  { %306 = vrsqrt.f32 %v57_v19  ;;  %vm61_vm2 = vcmp.eq.f32.partialorder %v57_v19, inf  ;;  %v64_v24 = vand.u32 2147483648, %v57_v19  ;;  %vm63_vm3 = vcmp.eq.f32.partialorder %v57_v19, 0.0 }
 0x121   :  { %v56_v20 = vpop.xlane.xlu1 %55 }
 0x122   :  { %v58_v21 = vmul.f32 0.032258064, %v56_v20 }
 0x124   :  { %308 = vrsqrt.f32 %v58_v21  ;;  %vm68_vm4 = vcmp.eq.f32.partialorder %v58_v21, inf  ;;  %v71_v30 = vand.u32 2147483648, %v58_v21  ;;  %vm70_vm5 = vcmp.eq.f32.partialorder %v58_v21, 0.0 }
 0x12d   :  { %v307_v22 = vpop.eup %306 }
 0x12e   :  { %v60_v23 = vmul.f32 %v307_v22, %v57_v19 }
 0x130   :  { %v62_v25 = vsel %vm61_vm2, %v57_v19, %v60_v23 }
 0x131   :  { %v309_v26 = vpop.eup %308  ;;  %v65_v27 = vsel %vm63_vm3, %v64_v24, %v62_v25 }
 0x132   :  { %v73_v28 = vadd.f32 1e-06, %v65_v27  ;;  %v67_v29 = vmul.f32 %v309_v26, %v58_v21 }
 0x134   :  { %310 = vrcp.f32 %v73_v28  ;;  %v69_v31 = vsel %vm68_vm4, %v58_v21, %v67_v29 }
 0x135   :  { %v72_v32 = vsel %vm70_vm5, %v71_v30, %v69_v31 }
 0x136   :  { %v74_v33 = vadd.f32 1e-06, %v72_v32 }
 0x138   :  { %312 = vrcp.f32 %v74_v33 }
 0x141   :  { %v311_v35 = vpop.eup %310 }
 0x142   :  { %v85_v38 = vmul.f32 %v311_v35, %v83_v36 }
 0x144   :  { %v93_v42 = vadd.f32 %v259_v40, %v85_v38 }
 0x145   :  { %v313_v39 = vpop.eup %312 }
 0x146   :  { %v86_v41 = vmul.f32 %v313_v39, %v84_v37 }
 0x148   :  { %v94_v43 = vadd.f32 %v259_v40, %v86_v41 }
 0x14a   :  { %v95_v44 = vpack.c.bf16 %v94_v43, %v93_v42 }
 0x14c   :  { %283 = vmatmul.mubr.msk.bf16.vlgmr.msra.gmra.mxu0 %vm37_vm0, %v95_v44 }
 0x20c   :  { %v156_v49 = vpop.f32.mrf.mxu0 }
 0x20d   :  { %v157_v51 = vadd.f32 %v260_v48, %v156_v49 }
 0x20e   :  { %v284_v50 = vpop.f32.mrf.mxu0 }
 0x20f   :  { %v163_v55 = vmax.f32 %v157_v51, 0.0 }
 0x210   :  { %v159_v52 = vpop.f32.mrf.mxu0 }
 0x211   :  { %v160_v53 = vadd.f32 %v260_v48, %v159_v52 }
 0x212   :  { %v285_v54 = vpop.f32.mrf.mxu0 }
 0x213   :  { %v164_v56 = vmax.f32 %v160_v53, 0.0 }
 0x215   :  { %v165_v57 = vpack.c.bf16 %v164_v56, %v163_v55 }
 0x217   :  { %295 = vmatmul.mubr.msk.bf16.vlgmr.msra.gmra.mxu1 %vm205_vm6, %v165_v57 }
 0x2d7   :  { %v243_v59 = vpop.f32.mrf.mxu1 }
 0x2d8   :  { %v244_v60 = vadd.f32 %v264_v58, %v243_v59 }
 0x2d9   :  { %v296_v61 = vpop.f32.mrf.mxu1 }
 0x2da   :  { %v250_v62 = vadd.f32 %v244_v60, %v369_v0 }
 0x2db   :  { %v246_v63 = vpop.f32.mrf.mxu1 }
 0x2dc   :  { %252 = vst.msk [vmem:[%s434_s9] sm:$0xff] %vm37_vm0, %v250_v62  ;;  %v247_v2 = vadd.f32 %v264_v58, %v246_v63 }
 0x2dd   :  { %v297_v3 = vpop.f32.mrf.mxu1 }
 0x2de   :  { %v251_v4 = vadd.f32 %v247_v2, %v374_v1 }
 0x2e0   :  { %253 = vst.msk [vmem:[%s434_s9 + $0x8] sm:$0xff] %vm37_vm0, %v251_v4 }

// kernel: encoder_forward.4
= control target key start
LH: loop header
LB: loop body
LE: loop exit
PB: predicated region body
PF: predicated region fallthrough
CT: control target
= control target key end

     0   :  { %13 = vsyncpa [#allocation4], 0  ;;  %s1749_s0 = inlined_call_operand.hbm [shape: f32[2,8,32], index: 0, kind: input, shape index: {}]   ;;  %s1750_s1 = inlined_call_operand.vmem [shape: f32[2,1,8], index: 1, kind: input, shape index: {}]   ;;  %s1751_s2 = inlined_call_operand.vmem [shape: f32[1,32], index: 2, kind: input, shape index: {}]   ;;  %s1752_s3 = inlined_call_operand.vmem [shape: f32[1,32], index: 3, kind: input, shape index: {}]   ;;  %s1753_s4 = inlined_call_operand.vmem [shape: bf16[32,96], index: 4, kind: input, shape index: {}]   ;;  %s1754_s5 = inlined_call_operand.vmem [shape: f32[1,96], index: 5, kind: input, shape index: {}]   ;;  %s1755_s6 = inlined_call_operand.hbm [shape: bf16[32,32], index: 6, kind: input, shape index: {}]   ;;  %s1756_s7 = inlined_call_operand.hbm [shape: f32[1,32], index: 7, kind: input, shape index: {}]   ;;  %s1757_s8 = inlined_call_operand.vmem [shape: f32[2,8,32], index: 8, kind: output, shape index: {}]  }
   0x1   :  { %15 = vsyncpa [#allocation4 + $0x1], 0 }
   0x2   :  { %16 = vsyncpa [#allocation6], 0  ;;  %s1518_s27 = smov 0   ;;  %s1520_s28 = smov 0  }
   0x3   :  { %s1522_s29 = smov 0   ;;  %s1524_s30 = smov 0  }
   0x4 LB: > { %s1537_s9 = sadd.s32 4294967295, %s1450_s30   ;;  %p42_p0 = scmp.ne.s32.totalorder %s1442_s28, %s1438_s27  ;;  %s1450_s30 = sphi %s1524_s30, %s1772_s30   ;;  %s1446_s29 = sphi %s1522_s29, %s1771_s29   ;;  %s1442_s28 = sphi %s1520_s28, %s1770_s28   ;;  %s1438_s27 = sphi %s1518_s27, %s1769_s27  }
   0x5   : > { %p1758_p1 = scmp.eq.s32.totalorder %s1537_s9, 0  ;;  %p1112_p2 = scmp.ge.s32.totalorder %s1450_s30, 1 }
   0x6   : > { %p231_p3 = scmp.lt.s32.totalorder %s1450_s30, 3  ;;  %s1452_s12 = smov [#allocation5]  }
   0x7   : > { %p1545_p4 = por %p1758_p1, %p42_p0  ;;  %s255_s13 = sshll.u32 %s1452_s12, 4  ;;  %s256_s13 = int_to_ptr.vmem [resolvable:$true] %s255_s13 }
   0x8   : > { %p1549_p5 = pnand %p1112_p2, %p231_p3  ;;  %s1453_s15 = smov [#allocation7]  }
   0x9   : > { %s1761_s10 = scalar_select %p1545_p4, 1, 0 }
   0xa   : > { %s1762_s11 = scalar_select %p1549_p5, 1, 0 }
   0xb   : > { %p1240_p6 = pneg %p1549_p5  ;;  %s269_s16 = sshll.u32 %s1453_s15, 4  ;;  %s270_s16 = int_to_ptr.vmem [resolvable:$true] %s269_s16 }
   0xc   : > { %s1343_s17 = scalar_lea.vmem %s256_s13, 256  ;;  %p1351_p12 = scmp.lt.s32.totalorder %s256_s13, %s256_s13 }
   0xd   : > { %p1557_p7 = pnand %p1240_p6, %p1758_p1  ;;  %p1344_p9 = scmp.ne.s32.totalorder %s256_s13, %s1343_s17 }
   0xe   : > { %p1352_p13 = scmp.lt.s32.totalorder %s1343_s17, %s1343_s17 }
   0xf   : > { %p1334_p8 = pneg %p1557_p7 }
  0x10   : > { %p1353_p0 = por %p1352_p13, %p1351_p12 }
  0x11   : > { %p1346_p10 = pnand %p1344_p9, %p1334_p8 }
  0x13   : > { %p1347_p11 = pneg %p1346_p10 }
  0x15   : > { %p1354_p2 = pnand %p1353_p0, %p1347_p11 }
  0x17   : > { %1357 = shalt.err (!%p1354_p2)
}
  0x18   : > { %s1454_s18 = smov 64   ;;  %s1455_s19 = smov 4  }
  0x19   : > { %1243 = dma.hbm_to_vmem [thread:$0]  (!%p1557_p7), %s1755_s6, 256, %s256_s13, [#allocation6], %s1454_s18, %s1454_s18, %s1455_s19  }
  0x1a   : > { %s1369_s22 = scalar_lea.vmem %s270_s16, 16  ;;  %s1376_s23 = scalar_lea.vmem %s270_s16, 32 }
  0x1b   : > { %p1370_p3 = scmp.ne.s32.totalorder %s270_s16, %s1369_s22  ;;  %p1377_p10 = scmp.lt.s32.totalorder %s270_s16, %s270_s16 }
  0x1c   : > { %p1378_p12 = scmp.lt.s32.totalorder %s1376_s23, %s1369_s22 }
  0x1d   : > { %p1372_p6 = pnand %p1370_p3, %p1334_p8 }
  0x1e   : > { %p1379_p11 = por %p1378_p12, %p1377_p10 }
  0x1f   : > { %p1373_p9 = pneg %p1372_p6 }
  0x21   : > { %p1380_p13 = pnand %p1379_p11, %p1373_p9 }
  0x23   : > { %1383 = shalt.err (!%p1380_p13)
}
  0x24   : > { %1246 = dma.hbm_to_vmem [thread:$0]  (!%p1557_p7), %s1756_s7, 16, %s270_s16, [#allocation6]  }
  0x25   : > { %s1580_s26 = sadd.s32 1, %s1450_s30   ;;  %s29_s27 = sadd.s32 1, %s1446_s29 }
  0x26   : > { %s26_s12 = ssub.s32 %s1450_s30, %s1580_s26  ;;  %p36_p8 = scmp.ne.s32.totalorder %s1446_s29, %s1442_s28 }
  0x27   : > { %p27_p0 = scmp.eq.s32.totalorder %s26_s12, 0  ;;  %p37_p2 = scmp.eq.s32.totalorder %s1450_s30, 0 }
  0x28   : > { %p1253_p3 = scmp.lt.s32.totalorder %s1450_s30, 2  ;;  %s280_s13 = sand.u32 1, %s1446_s29  }
  0x29   : > { %s1591_s14 = scalar_select %p27_p0, %s1446_s29, %s29_s27  }
  0x2a   : > { %p38_p6 = por %p37_p2, %p36_p8  ;;  %s1116_s15 = sshll.u32 %s280_s13, 3 }
  0x2b   : > { %s1117_s17 = sshll.u32 %s1450_s30, 7  ;;  %s284_s16 = scalar_lea.vmem [#allocation3], %s1116_s15 }
  0x2c   : > { %s1597_s20 = scalar_lea.hbm %s1749_s0, %s1117_s17  ;;  %s291_s21 = sshll.u32 %s284_s16, 4  ;;  %s292_s21 = int_to_ptr.vmem [resolvable:$true] %s291_s21 }
  0x2d   : > { %p1599_p7 = pnand %p1253_p3, %p38_p6  ;;  %s281_s23 = scalar_lea.sflag [#allocation4], %s280_s13 }
  0x2e   : > { %s1384_s24 = scalar_lea.hbm %s1597_s20, 128  ;;  %s1389_s27 = scalar_lea.hbm %s1749_s0, 256 }
  0x2f   : > { %p1385_p9 = scmp.ne.s32.totalorder %s1597_s20, %s1384_s24  ;;  %p1386_p10 = pneg %p1599_p7 }
  0x30   : > { %p1390_p13 = scmp.lt.s32.totalorder %s1597_s20, %s1749_s0  ;;  %p1391_p8 = scmp.lt.s32.totalorder %s1389_s27, %s1384_s24 }
  0x31   : > { %p1387_p12 = pnand %p1386_p10, %p1385_p9 }
  0x32   : > { %p1392_p0 = por %p1391_p8, %p1390_p13 }
  0x33   : > { %p1388_p11 = pneg %p1387_p12 }
  0x35   : > { %p1393_p2 = pnand %p1392_p0, %p1388_p11 }
  0x37   : > { %1396 = shalt.err (!%p1393_p2)
}
  0x38   : > { %s1397_s17 = scalar_lea.vmem %s292_s21, 128  ;;  %s1456_s13 = smov [#allocation3]  }
  0x39   : > { %p1398_p3 = scmp.ne.s32.totalorder %s292_s21, %s1397_s17  ;;  %s1402_s18 = sshll.u32 %s1456_s13, 4  ;;  %s1403_s18 = int_to_ptr.vmem [resolvable:$false] %s1402_s18 }
  0x3a   : > { %s1404_s19 = scalar_lea.vmem %s1403_s18, 256  ;;  %p1405_p9 = scmp.lt.s32.totalorder %s292_s21, %s1403_s18 }
  0x3b   : > { %p1400_p6 = pnand %p1398_p3, %p1386_p10  ;;  %p1406_p12 = scmp.lt.s32.totalorder %s1404_s19, %s1397_s17 }
  0x3d   : > { %p1401_p1 = pneg %p1400_p6  ;;  %p1407_p4 = por %p1406_p12, %p1405_p9 }
  0x3f   : > { %p1408_p5 = pnand %p1407_p4, %p1401_p1 }
  0x41   : > { %1411 = shalt.err (!%p1408_p5)
}
  0x42   : > { %1250 = dma.hbm_to_vmem [thread:$0]  (!%p1599_p7), %s1597_s20, 128, %s292_s21, %s281_s23  }
  0x43   : > { %p1765_p11 = scmp.ne.s32.totalorder %s1762_s11, 0 }
  0x44   : > { %s308_s16 = sand.u32 (!%p1765_p11), 1, %s1442_s28   ;;  %p1766_p10 = scmp.ne.s32.totalorder (!%p1765_p11), %s1761_s10, 0 }
  0x45   : > { %306 = sbr.rel (%p1765_p11) target bundleno = 1661 (0x67d), region = 52  ;;  %s1119_s24 = sshll.u32 (!%p1765_p11), %s308_s16, 3 }
  0x46   : > { %s309_s30 = scalar_lea.sflag (!%p1765_p11), [#allocation4], %s308_s16  ;;  %s312_s25 = scalar_lea.vmem (!%p1765_p11), [#allocation3], %s1119_s24 }
  0x4a   : > { %1429 = dma.done.wait (%p1766_p10), %s309_s30, 128  }
  0x4b   : > { %1431 = vsyncadd (%p1766_p10), %s309_s30, 4294967168  ;;  %p1767_p1 = scmp.eq.s32.totalorder %s1537_s9, 0 }
  0x4d   : > { %1433 = dma.done.wait (%p1767_p1), [#allocation6], 272   ;;  %p1768_p4 = pmov %p1767_p1 }
  0x4e   : > { %vm366_vm0 = vcmask 261120   ;;  %v1628_v0 = vld [vmem:[%s312_s25] sm:$0xff]  ;;  %v1457_v8 = vmov 0.0   ;;  %vm1458_vm1 = vmmov 0   ;;  %v1309_v9 = vld [vmem:[%s1753_s4] sm:$0xff]   ;;  %s1459_s13 = smov 120   ;;  %v525_v43 = vlaneseq }
  0x4f   : > { %1435 = vsyncadd (%p1768_p4), [#allocation6], 4294967024  ;;  %v367_v1 = vsel %vm366_vm0, %v1628_v0, 0.0  ;;  %v1308_v7 = vld [vmem:[%s1753_s4 + $0x8] sm:$0xff]   ;;  %1166 = vmatprep.subr.bf16.mxu0 %v1457_v8  ;;  %1170 = vmatprep.mubr.msk.bf16.mxu0 %vm1458_vm1, %v1457_v8  ;;  %v1123_v18 = vld [vmem:[%s1751_s2] ss:$0 sm:$0xff] }
  0x50   : > { %368 = vadd.xlane.f32.xlu0 %v367_v1  ;;  %1167 = vmatpush3.bf16.msra.mxu0 %v1308_v7  ;;  %v1124_v21 = vld [vmem:[%s1752_s3] ss:$0 sm:$0xff]  ;;  %s1460_s18 = smov 96   ;;  %s1461_s19 = smov 88   ;;  %vm476_vm4 = vcmask 64512   ;;  %v526_v46 = vshrl.u32 %v525_v43, 7 }
  0x51   : > { %1174 = vmatprep.subr.bf16.mxu1 %v1457_v8  ;;  %1168 = vmatprep.subr.bf16.mxu0 %v1457_v8  ;;  %v1125_v25 = vld [vmem:[%s1754_s5] ss:$0 sm:$0xff]  ;;  %s1462_s16 = smov 80   ;;  %s1463_s24 = smov 112   ;;  %vm546_vm5 = vcmask 1043456   ;;  %vm709_vm6 = vcmask 130112  }
  0x52   : > { %1176 = vmatprep.mubr.msk.bf16.mxu1 %vm1458_vm1, %v1457_v8  ;;  %s1464_s30 = smov 72   ;;  %s1465_s25 = smov 104   ;;  %v527_v48 = vsub.s32 0, %v526_v46  ;;  %vm827_vm7 = vcmask 195712   ;;  %vm945_vm8 = vcmask 261312  }
  0x53   : > { %p355_p5 = scmp.lt.s32.totalorder %s1537_s9, 1  ;;  %s1466_s21 = smov 64  }
  0x54   : > { %1169 = vmatpush3.bf16.msra.mxu0 %v1309_v9  ;;  %s1467_s22 = smov 56   ;;  %s1468_s23 = smov 48  }
  0x55   : > { %1180 = vmatprep.subr.bf16.mxu0 %v1457_v8  ;;  %s1774_s9 = smov (!%p355_p5, %s1537_s9), 1  ;;  %s1469_s27 = smov 40  }
  0x56   : > { %s357_s20 = scalar_lea.vmem %s1750_s1, %s1774_s9  ;;  %s1470_s12 = smov 8  }
  0x57   : > { %v469_v44 = vld [vmem:[%s357_s20] sm:$0x1]  ;;  %s1471_s15 = smov 16   ;;  %s1472_s17 = smov 24  }
  0x58   : > { %v1129_v45 = vadd.f32 -1.0, %v469_v44 }
  0x5a   : > { %v471_v47 = vmul.f32 1e+09, %v1129_v45 }
  0x5c   : > { %v528_v49 = vrot.slane %v471_v47, %v527_v48 }
  0xd9   : > { %v369_v2 = vpop.xlane.xlu0 %368 }
  0xda   : > { %v371_v3 = vmul.f32 0.03125, %v369_v2 }
  0xdc   : > { %v372_v4 = vsub.f32 %v1628_v0, %v371_v3 }
  0xde   : > { %v373_v5 = vmul.f32 %v372_v4, %v372_v4  ;;  %v393_v19 = vmul.f32 %v1123_v18, %v372_v4 }
  0xe0   : > { %v374_v6 = vsel %vm366_vm0, %v373_v5, 0.0 }
  0xe1   : > { %375 = vadd.xlane.f32.xlu0 %v374_v6 }
 0x16a   : > { %v376_v10 = vpop.xlane.xlu0 %375 }
 0x16b   : > { %v377_v11 = vmul.f32 0.032258064, %v376_v10 }
 0x16d   : > { %1312 = vrsqrt.f32 %v377_v11  ;;  %vm380_vm2 = vcmp.eq.f32.partialorder %v377_v11, inf  ;;  %v383_v14 = vand.u32 2147483648, %v377_v11  ;;  %vm382_vm3 = vcmp.eq.f32.partialorder %v377_v11, 0.0 }
 0x17a   : > { %v1313_v12 = vpop.eup %1312 }
 0x17b   : > { %v379_v13 = vmul.f32 %v1313_v12, %v377_v11 }
 0x17d   : > { %v381_v15 = vsel %vm380_vm2, %v377_v11, %v379_v13 }
 0x17e   : > { %v384_v16 = vsel %vm382_vm3, %v383_v14, %v381_v15 }
 0x17f   : > { %v385_v17 = vadd.f32 1e-06, %v384_v16 }
 0x181   : > { %1314 = vrcp.f32 %v385_v17 }
 0x18e   : > { %v1315_v20 = vpop.eup %1314 }
 0x18f   : > { %v394_v22 = vmul.f32 %v1315_v20, %v393_v19 }
 0x191   : > { %v401_v23 = vadd.f32 %v1124_v21, %v394_v22 }
 0x193   : > { %v402_v24 = vpack.c.bf16 %v401_v23, %v401_v23 }
 0x195   : > { %1171 = vmatmul.mubr.msk.bf16.vlgmr.msra.gmra.mxu0 %vm366_vm0, %v402_v24 }
 0x196   : > { %1182 = vmatprep.mubr.msk.bf16.mxu0 %vm1458_vm1, %v1457_v8 }
 0x255   : > { %v463_v26 = vpop.f32.mrf.mxu0 }
 0x256   : > { %v464_v27 = vadd.f32 %v1125_v25, %v463_v26 }
 0x257   : > { %v1172_v28 = vpop.f32.mrf.mxu0 }
 0x258   : > { %v1660_v29 = vpack.c.bf16 %v464_v27, %v464_v27 }
 0x259   : > { %v466_v30 = vpop.f32.mrf.mxu0 }
 0x25a   : > { %593 = vrot.lane.b32.xlu0 %v1660_v29, %s1459_s13  ;;  %474 = vrot.lane.b32.xlu1 %v1660_v29, %s1460_s18  ;;  %s1122_s13 = sshll.u32 %s1774_s9, 3 }
 0x25b   : > { %v1173_v31 = vpop.f32.mrf.mxu0 }
 0x25e   : > { %595 = vrot.lane.b32.xlu1 %v1660_v29, %s1461_s19 }
 0x262   : > { %713 = vrot.lane.b32.xlu1 %v1660_v29, %s1462_s16  ;;  %s361_s16 = scalar_lea.vmem %s1757_s8, %s1122_s13 }
 0x266   : > { %711 = vrot.lane.b32.xlu1 %v1660_v29, %s1463_s24 }
 0x26a   : > { %831 = vrot.lane.b32.xlu1 %v1660_v29, %s1464_s30 }
 0x26e   : > { %829 = vrot.lane.b32.xlu1 %v1660_v29, %s1465_s25 }
 0x2cc   : > { %v475_v32 = vpop.permute.xlu1 %474  ;;  %v594_v37 = vpop.permute.xlu0 %593 }
 0x2cd   : > { %v481_v33 = vsel %vm476_vm4, %v475_v32, 0 }
 0x2ce   : > { %1175 = vmatpush3.bf16.xpose.msra.mxu1 %v481_v33 }
 0x2cf   : > { %1186 = vmatprep.subr.bf16.mxu1 %v1457_v8 }
 0x2d0   : > { %v596_v34 = vpop.permute.xlu1 %595 }
 0x2d1   : > { %v601_v35 = vsel %vm476_vm4, %v596_v34, 0 }
 0x2d4   : > { %v714_v36 = vpop.permute.xlu1 %713 }
 0x2d5   : > { %1177 = vmatmul.mubr.msk.bf16.vlgmr.msra.gmra.mxu1 %vm476_vm4, %v1660_v29  ;;  %v719_v39 = vsel %vm476_vm4, %v714_v36, 0 }
 0x2d6   : > { %1187 = vmatpush3.bf16.xpose.msra.mxu1 %v601_v35  ;;  %1188 = vmatprep.mubr.msk.bf16.mxu1 %vm1458_vm1, %v1457_v8 }
 0x2d7   : > { %1198 = vmatprep.subr.bf16.mxu1 %v1457_v8 }
 0x2d8   : > { %v712_v38 = vpop.permute.xlu1 %711 }
 0x2dc   : > { %v832_v40 = vpop.permute.xlu1 %831 }
 0x2dd   : > { %1189 = vmatmul.mubr.msk.bf16.vlgmr.msra.gmra.mxu1 %vm476_vm4, %v594_v37  ;;  %v837_v41 = vsel %vm476_vm4, %v832_v40, 0 }
 0x2de   : > { %1199 = vmatpush3.bf16.xpose.msra.mxu1 %v719_v39  ;;  %1200 = vmatprep.mubr.msk.bf16.mxu1 %vm1458_vm1, %v1457_v8 }
 0x2df   : > { %1210 = vmatprep.subr.bf16.mxu1 %v1457_v8 }
 0x2e0   : > { %v830_v42 = vpop.permute.xlu1 %829 }
 0x2e5   : > { %1201 = vmatmul.mubr.msk.bf16.vlgmr.msra.gmra.mxu1 %vm476_vm4, %v712_v38 }
 0x2e6   : > { %1211 = vmatpush3.bf16.xpose.msra.mxu1 %v837_v41  ;;  %1212 = vmatprep.mubr.msk.bf16.mxu1 %vm1458_vm1, %v1457_v8 }
 0x2e7   : > { %1222 = vmatprep.subr.bf16.mxu1 %v1457_v8 }
 0x2ed   : > { %1213 = vmatmul.mubr.msk.bf16.vlgmr.msra.gmra.mxu1 %vm476_vm4, %v830_v42 }
 0x2ee   : > { %1226 = vmatprep.mubr.msk.bf16.mxu1 %vm1458_vm1, %v1457_v8 }
 0x395   : > { %v517_v50 = vpop.f32.mrf.mxu1 }
 0x396   : > { %v523_v51 = vmul.f32 0.35355338, %v517_v50 }
 0x397   : > { %v1178_v52 = vpop.f32.mrf.mxu1 }
 0x398   : > { %v530_v53 = vadd.f32 %v528_v49, %v523_v51 }
 0x399   : > { %v520_v54 = vpop.f32.mrf.mxu1 }
 0x39a   : > { %v531_v55 = vsel %vm476_vm4, %v530_v53, -inf }
 0x39b   : > { %532 = vmax.xlane.f32.xlu1 %v531_v55  ;;  %v1179_v56 = vpop.f32.mrf.mxu1 }
 0x39d   : > { %v637_v57 = vpop.f32.mrf.mxu1 }
 0x39e   : > { %v643_v58 = vmul.f32 0.35355338, %v637_v57 }
 0x39f   : > { %v1190_v59 = vpop.f32.mrf.mxu1 }
 0x3a0   : > { %v644_v60 = vadd.f32 %v643_v58, %v528_v49 }
 0x3a1   : > { %v640_v61 = vpop.f32.mrf.mxu1 }
 0x3a2   : > { %v645_v62 = vsel %vm476_vm4, %v644_v60, -inf }
 0x3a3   : > { %646 = vmax.xlane.f32.xlu0 %v645_v62  ;;  %v1191_v63 = vpop.f32.mrf.mxu1 }
 0x3a5   : > { %v755_v1 = vpop.f32.mrf.mxu1 }
 0x3a6   : > { %v761_v13 = vmul.f32 0.35355338, %v755_v1  ;;  %v1310_v1 = vld [vmem:[#allocation5 + $0x8] sm:$0xff]  }
 0x3a7   : > { %v1202_v2 = vpop.f32.mrf.mxu1  ;;  %1223 = vmatpush3.bf16.msra.mxu1 %v1310_v1 }
 0x3a8   : > { %v762_v14 = vadd.f32 %v761_v13, %v528_v49  ;;  %1224 = vmatprep.subr.bf16.mxu1 %v1457_v8 }
 0x3a9   : > { %v758_v3 = vpop.f32.mrf.mxu1 }
 0x3aa   : > { %v763_v15 = vsel %vm476_vm4, %v762_v14, -inf }
 0x3ab   : > { %v1203_v4 = vpop.f32.mrf.mxu1 }
 0x3ac   : > { %541 = vrot.lane.b32.xlu1 %v1660_v29, %s1466_s21  ;;  %v1311_v4 = vld [vmem:[#allocation5] sm:$0xff]  }
 0x3ad   : > { %v873_v5 = vpop.f32.mrf.mxu1  ;;  %1225 = vmatpush3.bf16.msra.mxu1 %v1311_v4 }
 0x3ae   : > { %v879_v6 = vmul.f32 0.35355338, %v873_v5 }
 0x3af   : > { %v1214_v7 = vpop.f32.mrf.mxu1 }
 0x3b0   : > { %v880_v9 = vadd.f32 %v879_v6, %v528_v49 }
 0x3b1   : > { %v876_v10 = vpop.f32.mrf.mxu1 }
 0x3b2   : > { %v881_v11 = vsel %vm476_vm4, %v880_v9, -inf }
 0x3b3   : > { %882 = vmax.xlane.f32.xlu0 %v881_v11  ;;  %v1215_v12 = vpop.f32.mrf.mxu1 }
 0x3c9   : > { %655 = vrot.lane.b32.xlu0 %v1660_v29, %s1467_s22 }
 0x3d0   : > { %764 = vmax.xlane.f32.xlu1 %v763_v15 }
 0x3e1   : > { %773 = vrot.lane.b32.xlu1 %v1660_v29, %s1468_s23 }
 0x3e5   : > { %891 = vrot.lane.b32.xlu1 %v1660_v29, %s1469_s27 }
 0x424   : > { %v533_v16 = vpop.xlane.xlu1 %532 }
 0x425   : > { %v534_v17 = vsub.f32 %v530_v53, %v533_v16 }
 0x427   : > { %v535_v18 = vmul.f32 1.442695, %v534_v17 }
 0x428   : > { %v542_v19 = vpop.permute.xlu1 %541 }
 0x429   : > { %1316 = vpow2.f32 %v535_v18  ;;  %v548_v20 = vsel %vm546_vm5, %v542_v19, 0 }
 0x42a   : > { %1181 = vmatpush3.bf16.msra.mxu0 %v548_v20  ;;  %v1138_v20 = vld [vmem:[#allocation7] ss:$0 sm:$0xff] }
 0x42b   : > { %1192 = vmatprep.subr.bf16.mxu0 %v1457_v8 }
 0x42c   : > { %v647_v21 = vpop.xlane.xlu0 %646 }
 0x42d   : > { %v648_v22 = vsub.f32 %v644_v60, %v647_v21  ;;  %v954_v21 = vadd.f32 %v1138_v20, %v1628_v0 }
 0x42f   : > { %v649_v23 = vmul.f32 1.442695, %v648_v22 }
 0x431   : > { %1318 = vpow2.f32 %v649_v23 }
 0x436   : > { %v1317_v24 = vpop.eup %1316 }
 0x437   : > { %v540_v25 = vpack.c.bf16 %v1317_v24, %v1317_v24  ;;  %v537_v36 = vsel %vm476_vm4, %v1317_v24, 0.0 }
 0x439   : > { %1183 = vmatmul.mubr.msk.bf16.vlgmr.msra.gmra.mxu0 %vm476_vm4, %v540_v25 }
 0x43a   : > { %1194 = vmatprep.mubr.msk.bf16.mxu0 %vm1458_vm1, %v1457_v8 }
 0x43c   : > { %v883_v26 = vpop.xlane.xlu0 %882 }
 0x43d   : > { %v884_v27 = vsub.f32 %v880_v9, %v883_v26 }
 0x43e   : > { %v1319_v28 = vpop.eup %1318 }
 0x43f   : > { %v885_v29 = vmul.f32 1.442695, %v884_v27  ;;  %v651_v30 = vsel %vm476_vm4, %v1319_v28, 0.0  ;;  %v654_v33 = vpack.c.bf16 %v1319_v28, %v1319_v28 }
 0x440   : > { %652 = vadd.xlane.f32.xlu0 %v651_v30  ;;  %v656_v31 = vpop.permute.xlu0 %655 }
 0x441   : > { %1320 = vpow2.f32 %v885_v29  ;;  %v661_v32 = vsel %vm546_vm5, %v656_v31, 0 }
 0x442   : > { %1193 = vmatpush3.bf16.msra.mxu0 %v661_v32 }
 0x443   : > { %1204 = vmatprep.subr.bf16.mxu0 %v1457_v8 }
 0x445   : > { %1195 = vmatmul.mubr.msk.bf16.vlgmr.msra.gmra.mxu0 %vm476_vm4, %v654_v33 }
 0x446   : > { %1206 = vmatprep.mubr.msk.bf16.mxu0 %vm1458_vm1, %v1457_v8 }
 0x44e   : > { %v1321_v34 = vpop.eup %1320 }
 0x44f   : > { %v887_v35 = vsel %vm476_vm4, %v1321_v34, 0.0  ;;  %v890_v47 = vpack.c.bf16 %v1321_v34, %v1321_v34 }
 0x450   : > { %888 = vadd.xlane.f32.xlu0 %v887_v35 }
 0x454   : > { %538 = vadd.xlane.f32.xlu0 %v537_v36 }
 0x459   : > { %v765_v37 = vpop.xlane.xlu1 %764 }
 0x45a   : > { %v766_v38 = vsub.f32 %v762_v14, %v765_v37 }
 0x45c   : > { %v767_v39 = vmul.f32 1.442695, %v766_v38 }
 0x45d   : > { %v774_v40 = vpop.permute.xlu1 %773 }
 0x45e   : > { %1322 = vpow2.f32 %v767_v39  ;;  %v779_v41 = vsel %vm546_vm5, %v774_v40, 0 }
 0x45f   : > { %1205 = vmatpush3.bf16.msra.mxu0 %v779_v41 }
 0x460   : > { %1216 = vmatprep.subr.bf16.mxu0 %v1457_v8 }
 0x461   : > { %v892_v43 = vpop.permute.xlu1 %891 }
 0x462   : > { %v897_v46 = vsel %vm546_vm5, %v892_v43, 0 }
 0x46b   : > { %v1323_v42 = vpop.eup %1322 }
 0x46c   : > { %v769_v44 = vsel %vm476_vm4, %v1323_v42, 0.0  ;;  %v772_v45 = vpack.c.bf16 %v1323_v42, %v1323_v42 }
 0x46d   : > { %770 = vadd.xlane.f32.xlu1 %v769_v44 }
 0x46e   : > { %1207 = vmatmul.mubr.msk.bf16.vlgmr.msra.gmra.mxu0 %vm476_vm4, %v772_v45 }
 0x46f   : > { %1217 = vmatpush3.bf16.msra.mxu0 %v897_v46  ;;  %1218 = vmatprep.mubr.msk.bf16.mxu0 %vm1458_vm1, %v1457_v8 }
 0x476   : > { %1219 = vmatmul.mubr.msk.bf16.vlgmr.msra.gmra.mxu0 %vm476_vm4, %v890_v47 }
 0x4c9   : > { %v653_v48 = vpop.xlane.xlu0 %652 }
 0x4d9   : > { %v889_v49 = vpop.xlane.xlu0 %888 }
 0x4dd   : > { %v539_v50 = vpop.xlane.xlu0 %538 }
 0x4de   : > { %1324 = vrcp.f32 %v539_v50 }
 0x4df   : > { %1326 = vrcp.f32 %v653_v48 }
 0x4eb   : > { %v1325_v51 = vpop.eup %1324 }
 0x4ec   : > { %v1327_v57 = vpop.eup %1326 }
 0x4f6   : > { %v771_v63 = vpop.xlane.xlu1 %770 }
 0x4f7   : > { %1328 = vrcp.f32 %v771_v63 }
 0x4f8   : > { %1330 = vrcp.f32 %v889_v49 }
 0x4f9   : > { %v584_v52 = vpop.f32.mrf.mxu0 }
 0x4fa   : > { %v591_v53 = vmul.f32 %v1325_v51, %v584_v52 }
 0x4fb   : > { %v1184_v54 = vpop.f32.mrf.mxu0 }
 0x4fc   : > { %592 = vst.msk [vmem:[#allocation2] sm:$0xff] %vm476_vm4, %v591_v53 }
 0x4fd   : > { %v587_v55 = vpop.f32.mrf.mxu0 }
 0x4ff   : > { %v1185_v56 = vpop.f32.mrf.mxu0 }
 0x504   : > { %v1329_v2 = vpop.eup %1328 }
 0x505   : > { %v697_v58 = vpop.f32.mrf.mxu0  ;;  %v1331_v10 = vpop.eup %1330 }
 0x506   : > { %v704_v59 = vmul.f32 %v1327_v57, %v697_v58 }
 0x507   : > { %v1196_v60 = vpop.f32.mrf.mxu0 }
 0x508   : > { %706 = vrot.lane.b32.xlu1 %v704_v59, %s1470_s12 }
 0x509   : > { %v700_v61 = vpop.f32.mrf.mxu0 }
 0x50b   : > { %v1197_v62 = vpop.f32.mrf.mxu0 }
 0x52e   : > { %v815_v3 = vpop.f32.mrf.mxu0 }
 0x52f   : > { %v822_v5 = vmul.f32 %v1329_v2, %v815_v3 }
 0x530   : > { %v1208_v6 = vpop.f32.mrf.mxu0 }
 0x531   : > { %824 = vrot.lane.b32.xlu0 %v822_v5, %s1471_s15 }
 0x532   : > { %v818_v7 = vpop.f32.mrf.mxu0 }
 0x534   : > { %v1209_v9 = vpop.f32.mrf.mxu0 }
 0x536   : > { %v933_v11 = vpop.f32.mrf.mxu0 }
 0x537   : > { %v940_v12 = vmul.f32 %v1331_v10, %v933_v11 }
 0x538   : > { %v1220_v13 = vpop.f32.mrf.mxu0 }
 0x539   : > { %942 = vrot.lane.b32.xlu1 %v940_v12, %s1472_s17 }
 0x53a   : > { %v936_v14 = vpop.f32.mrf.mxu0 }
 0x53c   : > { %v1221_v15 = vpop.f32.mrf.mxu0 }
 0x57a   : > { %v707_v16 = vpop.permute.xlu1 %706 }
 0x57b   : > { %710 = vst.msk [vmem:[#allocation2] sm:$0xff] %vm709_vm6, %v707_v16 }
 0x5a3   : > { %v825_v8 = vpop.permute.xlu0 %824 }
 0x5a4   : > { %828 = vst.msk [vmem:[#allocation2] sm:$0xff] %vm827_vm7, %v825_v8 }
 0x5ab   : > { %v943_v17 = vpop.permute.xlu1 %942 }
 0x5ac   : > { %946 = vst.msk [vmem:[#allocation2] sm:$0xff] %vm945_vm8, %v943_v17 }
 0x5b3   : > { %v955_v18 = vld [vmem:[#allocation2] sm:$0xff] }
 0x5b4   : > { %v956_v19 = vpack.c.bf16 %v955_v18, %v955_v18 }
 0x5b6   : > { %1227 = vmatmul.mubr.msk.bf16.vlgmr.msra.gmra.mxu1 %vm366_vm0, %v956_v19 }
 0x676   : > { %v1010_v22 = vpop.f32.mrf.mxu1 }
 0x677   : > { %v1016_v23 = vadd.f32 %v1010_v22, %v954_v21 }
 0x678   : > { %v1228_v24 = vpop.f32.mrf.mxu1 }
 0x679   : > { %1017 = vst.msk [vmem:[%s361_s16] sm:$0xff] %vm366_vm0, %v1016_v23 }
 0x67a   : > { %v1013_v25 = vpop.f32.mrf.mxu1 }
 0x67c   : > { %v1229_v26 = vpop.f32.mrf.mxu1 }
 0x67d PF: > { %p19_p7 = scmp.ge.s32.totalorder %s1580_s26, 4   ;;  %s1769_s27 = smov %s1442_s28 }
 0x67e   : > { %s1770_s28 = smov %s1446_s29  ;;  %s1771_s29 = smov %s1591_s14 }
 0x67f   : > { %s1772_s30 = smov %s1580_s26  ;;  %21 = sbr.rel (!%p19_p7) target bundleno = 4 (0x4), region = 103 }
 0x684   :  { %1037 = vsyncpa [#allocation4], 1 }
 0x685   :  { %1039 = vsyncpa [#allocation4 + $0x1], 1 }
 0x686   :  { %1040 = vsyncpa [#allocation6], 1 }

// kernel: encoder_forward.6
= control target key start
LH: loop header
LB: loop body
LE: loop exit
PB: predicated region body
PF: predicated region fallthrough
CT: control target
= control target key end

     0   :  { %s1264_s27 = smov 0   ;;  %s1397_s0 = inlined_call_operand.vmem [shape: f32[2,8,32], index: 0, kind: input, shape index: {}]   ;;  %s1398_s1 = inlined_call_operand.vmem [shape: f32[2,1,8], index: 1, kind: input, shape index: {}]   ;;  %s1399_s2 = inlined_call_operand.vmem [shape: f32[1,32], index: 2, kind: input, shape index: {}]   ;;  %s1400_s3 = inlined_call_operand.vmem [shape: f32[1,32], index: 3, kind: input, shape index: {}]   ;;  %s1401_s4 = inlined_call_operand.vmem [shape: bf16[32,96], index: 4, kind: input, shape index: {}]   ;;  %s1402_s5 = inlined_call_operand.vmem [shape: f32[1,96], index: 5, kind: input, shape index: {}]   ;;  %s1403_s6 = inlined_call_operand.vmem [shape: bf16[32,32], index: 6, kind: input, shape index: {}]   ;;  %s1404_s7 = inlined_call_operand.vmem [shape: f32[1,32], index: 7, kind: input, shape index: {}]   ;;  %s1405_s8 = inlined_call_operand.vmem [shape: f32[2,8,32], index: 8, kind: output, shape index: {}]  }
   0x1 LB: > { %s1033_s28 = sadd.s32 4294967295, %s1201_s27   ;;  %p1037_p0 = scmp.ge.s32.totalorder %s1201_s27, 1  ;;  %s1201_s27 = sphi %s1264_s27, %s18_s27  }
   0x2   : > { %p269_p1 = scmp.lt.s32.totalorder %s1201_s27, 3 }
   0x4   : > { %p270_p2 = pnand %p1037_p0, %p269_p1 }
   0x5   : > { %p304_p3 = scmp.lt.s32.totalorder (!%p270_p2), %s1033_s28, 1  ;;  %s1205_s21 = smov (!%p270_p2), 120  }
   0x6   : > { %273 = sbr.rel (%p270_p2) target bundleno = 1597 (0x63d), region = 52  ;;  %s1206_s22 = smov (!%p270_p2), 96  }
   0x7   : > { %s1207_s23 = smov (!%p270_p2), 88   ;;  %s1208_s24 = smov (!%p270_p2), 80  }
   0x8   : > { %s1209_s25 = smov (!%p270_p2), 112   ;;  %s1210_s26 = smov (!%p270_p2), 72  }
   0x9   : > { %s1211_s30 = smov (!%p270_p2), 104   ;;  %s1212_s12 = smov (!%p270_p2), 64  }
   0xa   : > { %s1213_s13 = smov (!%p270_p2), 56   ;;  %s1214_s14 = smov (!%p270_p2), 48  }
   0xb   : > { %s1407_s28 = smov (!%p304_p3, %s1033_s28), 1  ;;  %vm319_vm0 = vcmask 261120   ;;  %v1171_v7 = vld [vmem:[%s1401_s4 + $0x8] sm:$0xff]   ;;  %v1203_v8 = vmov 0.0   ;;  %vm1204_vm1 = vmmov 0   ;;  %v1172_v9 = vld [vmem:[%s1401_s4] sm:$0xff]   ;;  %v478_v43 = vlaneseq }
   0xc   : > { %s1038_s29 = sshll.u32 %s1407_s28, 3  ;;  %1083 = vmatprep.subr.bf16.mxu0 %v1203_v8  ;;  %1087 = vmatprep.mubr.msk.bf16.mxu0 %vm1204_vm1, %v1203_v8  ;;  %v1040_v18 = vld [vmem:[%s1399_s2] ss:$0 sm:$0xff]  ;;  %vm429_vm4 = vcmask 64512   ;;  %s310_s11 = scalar_lea.vmem %s1398_s1, %s1407_s28  ;;  %vm499_vm5 = vcmask 1043456   ;;  %vm662_vm6 = vcmask 130112  }
   0xd   : > { %s307_s10 = scalar_lea.vmem %s1397_s0, %s1038_s29  ;;  %1084 = vmatpush3.bf16.msra.mxu0 %v1171_v7  ;;  %1091 = vmatprep.subr.bf16.mxu1 %v1203_v8  ;;  %v1041_v21 = vld [vmem:[%s1400_s3] ss:$0 sm:$0xff]  ;;  %v479_v46 = vshrl.u32 %v478_v43, 7  ;;  %s1215_s15 = smov 40   ;;  %vm780_vm7 = vcmask 195712   ;;  %vm898_vm8 = vcmask 261312  }
   0xe   : > { %v1280_v0 = vld [vmem:[%s307_s10] sm:$0xff]  ;;  %1085 = vmatprep.subr.bf16.mxu0 %v1203_v8  ;;  %1093 = vmatprep.mubr.msk.bf16.mxu1 %vm1204_vm1, %v1203_v8  ;;  %s1216_s16 = smov 8  }
   0xf   : > { %v320_v1 = vsel %vm319_vm0, %v1280_v0, 0.0  ;;  %v1042_v25 = vld [vmem:[%s1402_s5] ss:$0 sm:$0xff]  ;;  %v480_v48 = vsub.s32 0, %v479_v46 }
  0x10   : > { %321 = vadd.xlane.f32.xlu0 %v320_v1  ;;  %v422_v44 = vld [vmem:[%s310_s11] sm:$0x1] }
  0x11   : > { %1086 = vmatpush3.bf16.msra.mxu0 %v1172_v9  ;;  %v1046_v45 = vadd.f32 -1.0, %v422_v44 }
  0x12   : > { %1097 = vmatprep.subr.bf16.mxu0 %v1203_v8 }
  0x13   : > { %v424_v47 = vmul.f32 1e+09, %v1046_v45 }
  0x15   : > { %v481_v49 = vrot.slane %v424_v47, %v480_v48 }
  0x99   : > { %v322_v2 = vpop.xlane.xlu0 %321 }
  0x9a   : > { %v324_v3 = vmul.f32 0.03125, %v322_v2 }
  0x9c   : > { %v325_v4 = vsub.f32 %v1280_v0, %v324_v3 }
  0x9e   : > { %v326_v5 = vmul.f32 %v325_v4, %v325_v4  ;;  %v346_v19 = vmul.f32 %v1040_v18, %v325_v4 }
  0xa0   : > { %v327_v6 = vsel %vm319_vm0, %v326_v5, 0.0 }
  0xa1   : > { %328 = vadd.xlane.f32.xlu0 %v327_v6 }
 0x12a   : > { %v329_v10 = vpop.xlane.xlu0 %328 }
 0x12b   : > { %v330_v11 = vmul.f32 0.032258064, %v329_v10 }
 0x12d   : > { %1175 = vrsqrt.f32 %v330_v11  ;;  %vm333_vm2 = vcmp.eq.f32.partialorder %v330_v11, inf  ;;  %v336_v14 = vand.u32 2147483648, %v330_v11  ;;  %vm335_vm3 = vcmp.eq.f32.partialorder %v330_v11, 0.0 }
 0x13a   : > { %v1176_v12 = vpop.eup %1175 }
 0x13b   : > { %v332_v13 = vmul.f32 %v1176_v12, %v330_v11 }
 0x13d   : > { %v334_v15 = vsel %vm333_vm2, %v330_v11, %v332_v13 }
 0x13e   : > { %v337_v16 = vsel %vm335_vm3, %v336_v14, %v334_v15 }
 0x13f   : > { %v338_v17 = vadd.f32 1e-06, %v337_v16 }
 0x141   : > { %1177 = vrcp.f32 %v338_v17 }
 0x14e   : > { %v1178_v20 = vpop.eup %1177 }
 0x14f   : > { %v347_v22 = vmul.f32 %v1178_v20, %v346_v19 }
 0x151   : > { %v354_v23 = vadd.f32 %v1041_v21, %v347_v22 }
 0x153   : > { %v355_v24 = vpack.c.bf16 %v354_v23, %v354_v23 }
 0x155   : > { %1088 = vmatmul.mubr.msk.bf16.vlgmr.msra.gmra.mxu0 %vm319_vm0, %v355_v24 }
 0x156   : > { %1099 = vmatprep.mubr.msk.bf16.mxu0 %vm1204_vm1, %v1203_v8 }
 0x215   : > { %v416_v26 = vpop.f32.mrf.mxu0 }
 0x216   : > { %v417_v27 = vadd.f32 %v1042_v25, %v416_v26 }
 0x217   : > { %v1089_v28 = vpop.f32.mrf.mxu0 }
 0x218   : > { %v1312_v29 = vpack.c.bf16 %v417_v27, %v417_v27 }
 0x219   : > { %v419_v30 = vpop.f32.mrf.mxu0 }
 0x21a   : > { %546 = vrot.lane.b32.xlu0 %v1312_v29, %s1205_s21  ;;  %427 = vrot.lane.b32.xlu1 %v1312_v29, %s1206_s22  ;;  %s1217_s21 = smov 16   ;;  %s1218_s22 = smov 24  }
 0x21b   : > { %v1090_v31 = vpop.f32.mrf.mxu0 }
 0x21e   : > { %548 = vrot.lane.b32.xlu1 %v1312_v29, %s1207_s23 }
 0x222   : > { %666 = vrot.lane.b32.xlu1 %v1312_v29, %s1208_s24 }
 0x226   : > { %664 = vrot.lane.b32.xlu1 %v1312_v29, %s1209_s25 }
 0x22a   : > { %784 = vrot.lane.b32.xlu1 %v1312_v29, %s1210_s26 }
 0x22e   : > { %782 = vrot.lane.b32.xlu1 %v1312_v29, %s1211_s30  ;;  %s314_s30 = scalar_lea.vmem %s1405_s8, %s1038_s29 }
 0x28c   : > { %v428_v32 = vpop.permute.xlu1 %427  ;;  %v547_v37 = vpop.permute.xlu0 %546 }
 0x28d   : > { %v434_v33 = vsel %vm429_vm4, %v428_v32, 0 }
 0x28e   : > { %1092 = vmatpush3.bf16.xpose.msra.mxu1 %v434_v33 }
 0x28f   : > { %1103 = vmatprep.subr.bf16.mxu1 %v1203_v8 }
 0x290   : > { %v549_v34 = vpop.permute.xlu1 %548 }
 0x291   : > { %v554_v35 = vsel %vm429_vm4, %v549_v34, 0 }
 0x294   : > { %v667_v36 = vpop.permute.xlu1 %666 }
 0x295   : > { %1094 = vmatmul.mubr.msk.bf16.vlgmr.msra.gmra.mxu1 %vm429_vm4, %v1312_v29  ;;  %v672_v39 = vsel %vm429_vm4, %v667_v36, 0 }
 0x296   : > { %1104 = vmatpush3.bf16.xpose.msra.mxu1 %v554_v35  ;;  %1105 = vmatprep.mubr.msk.bf16.mxu1 %vm1204_vm1, %v1203_v8 }
 0x297   : > { %1115 = vmatprep.subr.bf16.mxu1 %v1203_v8 }
 0x298   : > { %v665_v38 = vpop.permute.xlu1 %664 }
 0x29c   : > { %v785_v40 = vpop.permute.xlu1 %784 }
 0x29d   : > { %1106 = vmatmul.mubr.msk.bf16.vlgmr.msra.gmra.mxu1 %vm429_vm4, %v547_v37  ;;  %v790_v41 = vsel %vm429_vm4, %v785_v40, 0 }
 0x29e   : > { %1116 = vmatpush3.bf16.xpose.msra.mxu1 %v672_v39  ;;  %1117 = vmatprep.mubr.msk.bf16.mxu1 %vm1204_vm1, %v1203_v8 }
 0x29f   : > { %1127 = vmatprep.subr.bf16.mxu1 %v1203_v8 }
 0x2a0   : > { %v783_v42 = vpop.permute.xlu1 %782 }
 0x2a5   : > { %1118 = vmatmul.mubr.msk.bf16.vlgmr.msra.gmra.mxu1 %vm429_vm4, %v665_v38 }
 0x2a6   : > { %1128 = vmatpush3.bf16.xpose.msra.mxu1 %v790_v41  ;;  %1129 = vmatprep.mubr.msk.bf16.mxu1 %vm1204_vm1, %v1203_v8 }
 0x2a7   : > { %1139 = vmatprep.subr.bf16.mxu1 %v1203_v8 }
 0x2ad   : > { %1130 = vmatmul.mubr.msk.bf16.vlgmr.msra.gmra.mxu1 %vm429_vm4, %v783_v42 }
 0x2ae   : > { %1143 = vmatprep.mubr.msk.bf16.mxu1 %vm1204_vm1, %v1203_v8 }
 0x355   : > { %v470_v50 = vpop.f32.mrf.mxu1 }
 0x356   : > { %v476_v51 = vmul.f32 0.35355338, %v470_v50 }
 0x357   : > { %v1095_v52 = vpop.f32.mrf.mxu1 }
 0x358   : > { %v483_v53 = vadd.f32 %v481_v49, %v476_v51 }
 0x359   : > { %v473_v54 = vpop.f32.mrf.mxu1 }
 0x35a   : > { %v484_v55 = vsel %vm429_vm4, %v483_v53, -inf }
 0x35b   : > { %485 = vmax.xlane.f32.xlu1 %v484_v55  ;;  %v1096_v56 = vpop.f32.mrf.mxu1 }
 0x35d   : > { %v590_v57 = vpop.f32.mrf.mxu1 }
 0x35e   : > { %v596_v58 = vmul.f32 0.35355338, %v590_v57 }
 0x35f   : > { %v1107_v59 = vpop.f32.mrf.mxu1 }
 0x360   : > { %v597_v60 = vadd.f32 %v596_v58, %v481_v49 }
 0x361   : > { %v593_v61 = vpop.f32.mrf.mxu1 }
 0x362   : > { %v598_v62 = vsel %vm429_vm4, %v597_v60, -inf }
 0x363   : > { %599 = vmax.xlane.f32.xlu0 %v598_v62  ;;  %v1108_v63 = vpop.f32.mrf.mxu1 }
 0x365   : > { %v708_v1 = vpop.f32.mrf.mxu1 }
 0x366   : > { %v714_v13 = vmul.f32 0.35355338, %v708_v1  ;;  %v1173_v1 = vld [vmem:[%s1403_s6 + $0x8] sm:$0xff]  }
 0x367   : > { %v1119_v2 = vpop.f32.mrf.mxu1  ;;  %1140 = vmatpush3.bf16.msra.mxu1 %v1173_v1 }
 0x368   : > { %v715_v14 = vadd.f32 %v714_v13, %v481_v49  ;;  %1141 = vmatprep.subr.bf16.mxu1 %v1203_v8 }
 0x369   : > { %v711_v3 = vpop.f32.mrf.mxu1 }
 0x36a   : > { %v716_v15 = vsel %vm429_vm4, %v715_v14, -inf }
 0x36b   : > { %v1120_v4 = vpop.f32.mrf.mxu1 }
 0x36c   : > { %494 = vrot.lane.b32.xlu1 %v1312_v29, %s1212_s12  ;;  %v1174_v4 = vld [vmem:[%s1403_s6] sm:$0xff]  }
 0x36d   : > { %v826_v5 = vpop.f32.mrf.mxu1  ;;  %1142 = vmatpush3.bf16.msra.mxu1 %v1174_v4 }
 0x36e   : > { %v832_v6 = vmul.f32 0.35355338, %v826_v5 }
 0x36f   : > { %v1131_v7 = vpop.f32.mrf.mxu1 }
 0x370   : > { %v833_v9 = vadd.f32 %v832_v6, %v481_v49 }
 0x371   : > { %v829_v10 = vpop.f32.mrf.mxu1 }
 0x372   : > { %v834_v11 = vsel %vm429_vm4, %v833_v9, -inf }
 0x373   : > { %835 = vmax.xlane.f32.xlu0 %v834_v11  ;;  %v1132_v12 = vpop.f32.mrf.mxu1 }
 0x389   : > { %608 = vrot.lane.b32.xlu0 %v1312_v29, %s1213_s13 }
 0x390   : > { %717 = vmax.xlane.f32.xlu1 %v716_v15 }
 0x3a1   : > { %726 = vrot.lane.b32.xlu1 %v1312_v29, %s1214_s14 }
 0x3a5   : > { %844 = vrot.lane.b32.xlu1 %v1312_v29, %s1215_s15 }
 0x3e4   : > { %v486_v16 = vpop.xlane.xlu1 %485 }
 0x3e5   : > { %v487_v17 = vsub.f32 %v483_v53, %v486_v16 }
 0x3e7   : > { %v488_v18 = vmul.f32 1.442695, %v487_v17 }
 0x3e8   : > { %v495_v19 = vpop.permute.xlu1 %494 }
 0x3e9   : > { %1179 = vpow2.f32 %v488_v18  ;;  %v501_v20 = vsel %vm499_vm5, %v495_v19, 0 }
 0x3ea   : > { %1098 = vmatpush3.bf16.msra.mxu0 %v501_v20  ;;  %v1055_v20 = vld [vmem:[%s1404_s7] ss:$0 sm:$0xff] }
 0x3eb   : > { %1109 = vmatprep.subr.bf16.mxu0 %v1203_v8 }
 0x3ec   : > { %v600_v21 = vpop.xlane.xlu0 %599 }
 0x3ed   : > { %v601_v22 = vsub.f32 %v597_v60, %v600_v21  ;;  %v907_v21 = vadd.f32 %v1055_v20, %v1280_v0 }
 0x3ef   : > { %v602_v23 = vmul.f32 1.442695, %v601_v22 }
 0x3f1   : > { %1181 = vpow2.f32 %v602_v23 }
 0x3f6   : > { %v1180_v24 = vpop.eup %1179 }
 0x3f7   : > { %v493_v25 = vpack.c.bf16 %v1180_v24, %v1180_v24  ;;  %v490_v36 = vsel %vm429_vm4, %v1180_v24, 0.0 }
 0x3f9   : > { %1100 = vmatmul.mubr.msk.bf16.vlgmr.msra.gmra.mxu0 %vm429_vm4, %v493_v25 }
 0x3fa   : > { %1111 = vmatprep.mubr.msk.bf16.mxu0 %vm1204_vm1, %v1203_v8 }
 0x3fc   : > { %v836_v26 = vpop.xlane.xlu0 %835 }
 0x3fd   : > { %v837_v27 = vsub.f32 %v833_v9, %v836_v26 }
 0x3fe   : > { %v1182_v28 = vpop.eup %1181 }
 0x3ff   : > { %v838_v29 = vmul.f32 1.442695, %v837_v27  ;;  %v604_v30 = vsel %vm429_vm4, %v1182_v28, 0.0  ;;  %v607_v33 = vpack.c.bf16 %v1182_v28, %v1182_v28 }
 0x400   : > { %605 = vadd.xlane.f32.xlu0 %v604_v30  ;;  %v609_v31 = vpop.permute.xlu0 %608 }
 0x401   : > { %1183 = vpow2.f32 %v838_v29  ;;  %v614_v32 = vsel %vm499_vm5, %v609_v31, 0 }
 0x402   : > { %1110 = vmatpush3.bf16.msra.mxu0 %v614_v32 }
 0x403   : > { %1121 = vmatprep.subr.bf16.mxu0 %v1203_v8 }
 0x405   : > { %1112 = vmatmul.mubr.msk.bf16.vlgmr.msra.gmra.mxu0 %vm429_vm4, %v607_v33 }
 0x406   : > { %1123 = vmatprep.mubr.msk.bf16.mxu0 %vm1204_vm1, %v1203_v8 }
 0x40e   : > { %v1184_v34 = vpop.eup %1183 }
 0x40f   : > { %v840_v35 = vsel %vm429_vm4, %v1184_v34, 0.0  ;;  %v843_v47 = vpack.c.bf16 %v1184_v34, %v1184_v34 }
 0x410   : > { %841 = vadd.xlane.f32.xlu0 %v840_v35 }
 0x414   : > { %491 = vadd.xlane.f32.xlu0 %v490_v36 }
 0x419   : > { %v718_v37 = vpop.xlane.xlu1 %717 }
 0x41a   : > { %v719_v38 = vsub.f32 %v715_v14, %v718_v37 }
 0x41c   : > { %v720_v39 = vmul.f32 1.442695, %v719_v38 }
 0x41d   : > { %v727_v40 = vpop.permute.xlu1 %726 }
 0x41e   : > { %1185 = vpow2.f32 %v720_v39  ;;  %v732_v41 = vsel %vm499_vm5, %v727_v40, 0 }
 0x41f   : > { %1122 = vmatpush3.bf16.msra.mxu0 %v732_v41 }
 0x420   : > { %1133 = vmatprep.subr.bf16.mxu0 %v1203_v8 }
 0x421   : > { %v845_v43 = vpop.permute.xlu1 %844 }
 0x422   : > { %v850_v46 = vsel %vm499_vm5, %v845_v43, 0 }
 0x42b   : > { %v1186_v42 = vpop.eup %1185 }
 0x42c   : > { %v722_v44 = vsel %vm429_vm4, %v1186_v42, 0.0  ;;  %v725_v45 = vpack.c.bf16 %v1186_v42, %v1186_v42 }
 0x42d   : > { %723 = vadd.xlane.f32.xlu1 %v722_v44 }
 0x42e   : > { %1124 = vmatmul.mubr.msk.bf16.vlgmr.msra.gmra.mxu0 %vm429_vm4, %v725_v45 }
 0x42f   : > { %1134 = vmatpush3.bf16.msra.mxu0 %v850_v46  ;;  %1135 = vmatprep.mubr.msk.bf16.mxu0 %vm1204_vm1, %v1203_v8 }
 0x436   : > { %1136 = vmatmul.mubr.msk.bf16.vlgmr.msra.gmra.mxu0 %vm429_vm4, %v843_v47 }
 0x489   : > { %v606_v48 = vpop.xlane.xlu0 %605 }
 0x499   : > { %v842_v49 = vpop.xlane.xlu0 %841 }
 0x49d   : > { %v492_v50 = vpop.xlane.xlu0 %491 }
 0x49e   : > { %1187 = vrcp.f32 %v492_v50 }
 0x49f   : > { %1189 = vrcp.f32 %v606_v48 }
 0x4ab   : > { %v1188_v51 = vpop.eup %1187 }
 0x4ac   : > { %v1190_v57 = vpop.eup %1189 }
 0x4b6   : > { %v724_v63 = vpop.xlane.xlu1 %723 }
 0x4b7   : > { %1191 = vrcp.f32 %v724_v63 }
 0x4b8   : > { %1193 = vrcp.f32 %v842_v49 }
 0x4b9   : > { %v537_v52 = vpop.f32.mrf.mxu0 }
 0x4ba   : > { %v544_v53 = vmul.f32 %v1188_v51, %v537_v52 }
 0x4bb   : > { %v1101_v54 = vpop.f32.mrf.mxu0 }
 0x4bc   : > { %545 = vst.msk [vmem:[#allocation2] sm:$0xff] %vm429_vm4, %v544_v53 }
 0x4bd   : > { %v540_v55 = vpop.f32.mrf.mxu0 }
 0x4bf   : > { %v1102_v56 = vpop.f32.mrf.mxu0 }
 0x4c4   : > { %v1192_v2 = vpop.eup %1191 }
 0x4c5   : > { %v650_v58 = vpop.f32.mrf.mxu0  ;;  %v1194_v10 = vpop.eup %1193 }
 0x4c6   : > { %v657_v59 = vmul.f32 %v1190_v57, %v650_v58 }
 0x4c7   : > { %v1113_v60 = vpop.f32.mrf.mxu0 }
 0x4c8   : > { %659 = vrot.lane.b32.xlu1 %v657_v59, %s1216_s16 }
 0x4c9   : > { %v653_v61 = vpop.f32.mrf.mxu0 }
 0x4cb   : > { %v1114_v62 = vpop.f32.mrf.mxu0 }
 0x4ee   : > { %v768_v3 = vpop.f32.mrf.mxu0 }
 0x4ef   : > { %v775_v5 = vmul.f32 %v1192_v2, %v768_v3 }
 0x4f0   : > { %v1125_v6 = vpop.f32.mrf.mxu0 }
 0x4f1   : > { %777 = vrot.lane.b32.xlu0 %v775_v5, %s1217_s21 }
 0x4f2   : > { %v771_v7 = vpop.f32.mrf.mxu0 }
 0x4f4   : > { %v1126_v9 = vpop.f32.mrf.mxu0 }
 0x4f6   : > { %v886_v11 = vpop.f32.mrf.mxu0 }
 0x4f7   : > { %v893_v12 = vmul.f32 %v1194_v10, %v886_v11 }
 0x4f8   : > { %v1137_v13 = vpop.f32.mrf.mxu0 }
 0x4f9   : > { %895 = vrot.lane.b32.xlu1 %v893_v12, %s1218_s22 }
 0x4fa   : > { %v889_v14 = vpop.f32.mrf.mxu0 }
 0x4fc   : > { %v1138_v15 = vpop.f32.mrf.mxu0 }
 0x53a   : > { %v660_v16 = vpop.permute.xlu1 %659 }
 0x53b   : > { %663 = vst.msk [vmem:[#allocation2] sm:$0xff] %vm662_vm6, %v660_v16 }
 0x563   : > { %v778_v8 = vpop.permute.xlu0 %777 }
 0x564   : > { %781 = vst.msk [vmem:[#allocation2] sm:$0xff] %vm780_vm7, %v778_v8 }
 0x56b   : > { %v896_v17 = vpop.permute.xlu1 %895 }
 0x56c   : > { %899 = vst.msk [vmem:[#allocation2] sm:$0xff] %vm898_vm8, %v896_v17 }
 0x573   : > { %v908_v18 = vld [vmem:[#allocation2] sm:$0xff] }
 0x574   : > { %v909_v19 = vpack.c.bf16 %v908_v18, %v908_v18 }
 0x576   : > { %1144 = vmatmul.mubr.msk.bf16.vlgmr.msra.gmra.mxu1 %vm319_vm0, %v909_v19 }
 0x636   : > { %v963_v22 = vpop.f32.mrf.mxu1 }
 0x637   : > { %v969_v23 = vadd.f32 %v963_v22, %v907_v21 }
 0x638   : > { %v1145_v24 = vpop.f32.mrf.mxu1 }
 0x639   : > { %970 = vst.msk [vmem:[%s314_s30] sm:$0xff] %vm319_vm0, %v969_v23 }
 0x63a   : > { %v966_v25 = vpop.f32.mrf.mxu1 }
 0x63c   : > { %v1146_v26 = vpop.f32.mrf.mxu1 }
 0x63d PF: > { %s18_s27 = sadd.s32 1, %s1201_s27  }
 0x63e   : > { %p15_p4 = scmp.ge.s32.totalorder %s18_s27, 4  }
 0x640   :  { %17 = sbr.rel (!%p15_p4) target bundleno = 1 (0x1), region = 85 }

// kernel: encoder_forward.7
= control target key start
LH: loop header
LB: loop body
LE: loop exit
PB: predicated region body
PF: predicated region fallthrough
CT: control target
= control target key end

     0   :  { %vm38_vm0 = vcmask 261120   ;;  %s541_s0 = inlined_call_operand.vmem [shape: f32[16,32], index: 0, kind: input, shape index: {}]   ;;  %s542_s1 = inlined_call_operand.vmem [shape: f32[1,32], index: 1, kind: input, shape index: {}]   ;;  %s543_s2 = inlined_call_operand.vmem [shape: f32[1,32], index: 2, kind: input, shape index: {}]   ;;  %s544_s3 = inlined_call_operand.vmem [shape: bf16[32,64], index: 3, kind: input, shape index: {}]   ;;  %s545_s4 = inlined_call_operand.vmem [shape: f32[1,64], index: 4, kind: input, shape index: {}]   ;;  %s546_s5 = inlined_call_operand.vmem [shape: bf16[64,32], index: 5, kind: input, shape index: {}]   ;;  %s547_s6 = inlined_call_operand.vmem [shape: f32[1,32], index: 6, kind: input, shape index: {}]   ;;  %s548_s7 = inlined_call_operand.vmem [shape: f32[1,32], index: 7, kind: input, shape index: {}]   ;;  %s549_s8 = inlined_call_operand.vmem [shape: f32[1,32], index: 8, kind: input, shape index: {}]   ;;  %s550_s9 = inlined_call_operand.hbm [shape: f32[16,32], index: 9, kind: output, shape index: {}]  }
   0x1   :  { %v478_v0 = vld [vmem:[%s541_s0] sm:$0xff]  ;;  %v483_v1 = vld [vmem:[%s541_s0 + $0x8] sm:$0xff] }
   0x2   :  { %v39_v2 = vsel %vm38_vm0, %v478_v0, 0.0  ;;  %v42_v3 = vsel %vm38_vm0, %v483_v1, 0.0 }
   0x3   :  { %40 = vadd.xlane.f32.xlu0 %v39_v2 }
   0x4   :  { %14 = vsyncpa [#allocation3], 0  ;;  %v376_v14 = vld [vmem:[%s544_s3 + $0x8] sm:$0xff]   ;;  %v420_v15 = vmov 0.0   ;;  %vm421_vm1 = vmmov 0   ;;  %v377_v16 = vld [vmem:[%s544_s3] sm:$0xff]  }
   0x5   :  { %351 = vmatprep.subr.bf16.mxu0 %v420_v15  ;;  %355 = vmatprep.mubr.msk.bf16.mxu0 %vm421_vm1, %v420_v15  ;;  %v378_v17 = vld [vmem:[%s546_s5 + $0x18] sm:$0xff]   ;;  %v329_v34 = vld [vmem:[%s542_s1] ss:$0 sm:$0xff]  ;;  %v379_v45 = vld [vmem:[%s546_s5 + $0x10] sm:$0xff]   ;;  %vm206_vm6 = vcmask 523264   ;;  %s422_s30 = smov [#allocation2]  }
   0x6   :  { %352 = vmatpush3.bf16.msra.mxu0 %v376_v14  ;;  %359 = vmatprep.subr.bf16.mxu1 %v420_v15  ;;  %v330_v40 = vld [vmem:[%s543_s2] ss:$0 sm:$0xff]  ;;  %v380_v46 = vld [vmem:[%s546_s5 + $0x8] sm:$0xff]   ;;  %s318_s10 = sshll.u32 %s422_s30, 4  ;;  %s319_s10 = int_to_ptr.vmem [resolvable:$true] %s318_s10 }
   0x7   :  { %43 = vadd.xlane.f32.xlu0 %v42_v3  ;;  %353 = vmatprep.subr.bf16.mxu0 %v420_v15  ;;  %v381_v47 = vld [vmem:[%s546_s5] sm:$0xff]   ;;  %p403_p1 = scmp.lt.s32.totalorder %s319_s10, %s319_s10 }
   0x8   :  { %367 = vmatprep.mubr.msk.bf16.mxu1 %vm421_vm1, %v420_v15  ;;  %360 = vmatpush3.bf16.msra.mxu1 %v378_v17  ;;  %v331_v48 = vld [vmem:[%s545_s4] ss:$0 sm:$0xff] }
   0x9   :  { %361 = vmatprep.subr.bf16.mxu1 %v420_v15  ;;  %v335_v58 = vld [vmem:[%s547_s6] ss:$0 sm:$0xff] }
   0xa   :  { %354 = vmatpush3.bf16.msra.mxu0 %v377_v16 }
   0xc   :  { %362 = vmatpush3.bf16.msra.mxu1 %v379_v45 }
   0xd   :  { %363 = vmatprep.subr.bf16.mxu1 %v420_v15 }
  0x10   :  { %364 = vmatpush3.bf16.msra.mxu1 %v380_v46 }
  0x11   :  { %365 = vmatprep.subr.bf16.mxu1 %v420_v15 }
  0x14   :  { %366 = vmatpush3.bf16.msra.mxu1 %v381_v47 }
  0x8c   :  { %v41_v4 = vpop.xlane.xlu0 %40 }
  0x8d   :  { %v46_v5 = vmul.f32 0.03125, %v41_v4 }
  0x8f   :  { %v48_v6 = vsub.f32 %v478_v0, %v46_v5 }
  0x90   :  { %v44_v7 = vpop.xlane.xlu0 %43 }
  0x91   :  { %v47_v8 = vmul.f32 0.03125, %v44_v7  ;;  %v50_v9 = vmul.f32 %v48_v6, %v48_v6  ;;  %v84_v36 = vmul.f32 %v329_v34, %v48_v6 }
  0x93   :  { %v49_v10 = vsub.f32 %v483_v1, %v47_v8  ;;  %v52_v11 = vsel %vm38_vm0, %v50_v9, 0.0 }
  0x94   :  { %53 = vadd.xlane.f32.xlu1 %v52_v11 }
  0x95   :  { %v51_v12 = vmul.f32 %v49_v10, %v49_v10  ;;  %v85_v37 = vmul.f32 %v329_v34, %v49_v10  ;;  %v342_v34 = vld [vmem:[%s549_s8] ss:$0 sm:$0xff] }
  0x97   :  { %v55_v13 = vsel %vm38_vm0, %v51_v12, 0.0 }
  0x98   :  { %56 = vadd.xlane.f32.xlu1 %v55_v13 }
 0x11d   :  { %v54_v18 = vpop.xlane.xlu1 %53 }
 0x11e   :  { %v58_v19 = vmul.f32 0.032258064, %v54_v18 }
 0x120   :  { %382 = vrsqrt.f32 %v58_v19  ;;  %vm62_vm2 = vcmp.eq.f32.partialorder %v58_v19, inf  ;;  %v65_v24 = vand.u32 2147483648, %v58_v19  ;;  %vm64_vm3 = vcmp.eq.f32.partialorder %v58_v19, 0.0 }
 0x121   :  { %v57_v20 = vpop.xlane.xlu1 %56 }
 0x122   :  { %v59_v21 = vmul.f32 0.032258064, %v57_v20 }
 0x124   :  { %384 = vrsqrt.f32 %v59_v21  ;;  %vm69_vm4 = vcmp.eq.f32.partialorder %v59_v21, inf  ;;  %v72_v30 = vand.u32 2147483648, %v59_v21  ;;  %vm71_vm5 = vcmp.eq.f32.partialorder %v59_v21, 0.0 }
 0x12d   :  { %v383_v22 = vpop.eup %382 }
 0x12e   :  { %v61_v23 = vmul.f32 %v383_v22, %v58_v19 }
 0x130   :  { %v63_v25 = vsel %vm62_vm2, %v58_v19, %v61_v23 }
 0x131   :  { %v385_v26 = vpop.eup %384  ;;  %v66_v27 = vsel %vm64_vm3, %v65_v24, %v63_v25 }
 0x132   :  { %v74_v28 = vadd.f32 1e-06, %v66_v27  ;;  %v68_v29 = vmul.f32 %v385_v26, %v59_v21 }
 0x134   :  { %386 = vrcp.f32 %v74_v28  ;;  %v70_v31 = vsel %vm69_vm4, %v59_v21, %v68_v29 }
 0x135   :  { %v73_v32 = vsel %vm71_vm5, %v72_v30, %v70_v31  ;;  %v341_v31 = vld [vmem:[%s548_s7] ss:$0 sm:$0xff]  ;;  %s398_s7 = scalar_lea.vmem %s319_s10, 256 }
 0x136   :  { %v75_v33 = vadd.f32 1e-06, %v73_v32  ;;  %p399_p0 = scmp.ne.s32.totalorder %s319_s10, %s398_s7  ;;  %p404_p2 = scmp.lt.s32.totalorder %s398_s7, %s398_s7 }
 0x138   :  { %388 = vrcp.f32 %v75_v33  ;;  %p405_p3 = por %p404_p2, %p403_p1 }
 0x13a   :  { %p406_p4 = pnand %p405_p3, %p399_p0 }
 0x141   :  { %v387_v35 = vpop.eup %386 }
 0x142   :  { %v86_v38 = vmul.f32 %v387_v35, %v84_v36 }
 0x144   :  { %v94_v42 = vadd.f32 %v330_v40, %v86_v38 }
 0x145   :  { %v389_v39 = vpop.eup %388 }
 0x146   :  { %v87_v41 = vmul.f32 %v389_v39, %v85_v37 }
 0x148   :  { %v95_v43 = vadd.f32 %v330_v40, %v87_v41 }
 0x14a   :  { %v96_v44 = vpack.c.bf16 %v95_v43, %v94_v42 }
 0x14c   :  { %356 = vmatmul.mubr.msk.bf16.vlgmr.msra.gmra.mxu0 %vm38_vm0, %v96_v44 }
 0x20c   :  { %v157_v49 = vpop.f32.mrf.mxu0 }
 0x20d   :  { %v158_v51 = vadd.f32 %v331_v48, %v157_v49 }
 0x20e   :  { %v357_v50 = vpop.f32.mrf.mxu0 }
 0x20f   :  { %v164_v55 = vmax.f32 %v158_v51, 0.0 }
 0x210   :  { %v160_v52 = vpop.f32.mrf.mxu0 }
 0x211   :  { %v161_v53 = vadd.f32 %v331_v48, %v160_v52 }
 0x212   :  { %v358_v54 = vpop.f32.mrf.mxu0 }
 0x213   :  { %v165_v56 = vmax.f32 %v161_v53, 0.0 }
 0x215   :  { %v166_v57 = vpack.c.bf16 %v165_v56, %v164_v55 }
 0x217   :  { %368 = vmatmul.mubr.msk.bf16.vlgmr.msra.gmra.mxu1 %vm206_vm6, %v166_v57 }
 0x2d7   :  { %v244_v59 = vpop.f32.mrf.mxu1 }
 0x2d8   :  { %v245_v60 = vadd.f32 %v335_v58, %v244_v59 }
 0x2d9   :  { %v369_v61 = vpop.f32.mrf.mxu1 }
 0x2da   :  { %v251_v62 = vadd.f32 %v245_v60, %v478_v0 }
 0x2db   :  { %v247_v63 = vpop.f32.mrf.mxu1 }
 0x2dc   :  { %v248_v2 = vadd.f32 %v335_v58, %v247_v63  ;;  %v255_v3 = vsel %vm38_vm0, %v251_v62, 0.0 }
 0x2dd   :  { %256 = vadd.xlane.f32.xlu0 %v255_v3  ;;  %v370_v4 = vpop.f32.mrf.mxu1 }
 0x2de   :  { %v252_v5 = vadd.f32 %v248_v2, %v483_v1 }
 0x2e0   :  { %v258_v6 = vsel %vm38_vm0, %v252_v5, 0.0 }
 0x2e1   :  { %259 = vadd.xlane.f32.xlu1 %v258_v6 }
 0x366   :  { %v257_v7 = vpop.xlane.xlu0 %256 }
 0x367   :  { %v261_v8 = vmul.f32 0.03125, %v257_v7 }
 0x369   :  { %v263_v9 = vsub.f32 %v251_v62, %v261_v8 }
 0x36a   :  { %v260_v10 = vpop.xlane.xlu1 %259 }
 0x36b   :  { %v262_v11 = vmul.f32 0.03125, %v260_v10  ;;  %v265_v12 = vmul.f32 %v263_v9, %v263_v9  ;;  %v299_v32 = vmul.f32 %v341_v31, %v263_v9 }
 0x36d   :  { %v264_v13 = vsub.f32 %v252_v5, %v262_v11  ;;  %v267_v0 = vsel %vm38_vm0, %v265_v12, 0.0 }
 0x36e   :  { %268 = vadd.xlane.f32.xlu0 %v267_v0 }
 0x36f   :  { %v266_v14 = vmul.f32 %v264_v13, %v264_v13  ;;  %v300_v36 = vmul.f32 %v341_v31, %v264_v13 }
 0x371   :  { %v270_v15 = vsel %vm38_vm0, %v266_v14, 0.0 }
 0x372   :  { %271 = vadd.xlane.f32.xlu1 %v270_v15 }
 0x3f7   :  { %v269_v16 = vpop.xlane.xlu0 %268 }
 0x3f8   :  { %v273_v17 = vmul.f32 0.032258064, %v269_v16 }
 0x3fa   :  { %390 = vrsqrt.f32 %v273_v17  ;;  %vm277_vm7 = vcmp.eq.f32.partialorder %v273_v17, inf  ;;  %v280_v21 = vand.u32 2147483648, %v273_v17  ;;  %vm279_vm8 = vcmp.eq.f32.partialorder %v273_v17, 0.0 }
 0x3fb   :  { %v272_v1 = vpop.xlane.xlu1 %271 }
 0x3fc   :  { %v274_v18 = vmul.f32 0.032258064, %v272_v1 }
 0x3fe   :  { %392 = vrsqrt.f32 %v274_v18  ;;  %vm284_vm9 = vcmp.eq.f32.partialorder %v274_v18, inf  ;;  %v287_v27 = vand.u32 2147483648, %v274_v18  ;;  %vm286_vm10 = vcmp.eq.f32.partialorder %v274_v18, 0.0 }
 0x407   :  { %v391_v19 = vpop.eup %390 }
 0x408   :  { %v276_v20 = vmul.f32 %v391_v19, %v273_v17 }
 0x40a   :  { %v278_v22 = vsel %vm277_vm7, %v273_v17, %v276_v20 }
 0x40b   :  { %v393_v23 = vpop.eup %392  ;;  %v281_v24 = vsel %vm279_vm8, %v280_v21, %v278_v22 }
 0x40c   :  { %v289_v25 = vadd.f32 1e-06, %v281_v24  ;;  %v283_v26 = vmul.f32 %v393_v23, %v274_v18 }
 0x40e   :  { %394 = vrcp.f32 %v289_v25  ;;  %v285_v28 = vsel %vm284_vm9, %v274_v18, %v283_v26 }
 0x40f   :  { %v288_v29 = vsel %vm286_vm10, %v287_v27, %v285_v28 }
 0x410   :  { %v290_v30 = vadd.f32 1e-06, %v288_v29 }
 0x412   :  { %396 = vrcp.f32 %v290_v30 }
 0x41b   :  { %v395_v33 = vpop.eup %394 }
 0x41c   :  { %v301_v35 = vmul.f32 %v395_v33, %v299_v32 }
 0x41e   :  { %v309_v37 = vadd.f32 %v342_v34, %v301_v35 }
 0x41f   :  { %v397_v38 = vpop.eup %396 }
 0x420   :  { %v302_v39 = vmul.f32 %v397_v38, %v300_v36  ;;  %311 = vst.msk [vmem:[#allocation2] sm:$0xff] %vm38_vm0, %v309_v37 }
 0x422   :  { %v310_v40 = vadd.f32 %v342_v34, %v302_v39 }
 0x424   :  { %312 = vst.msk [vmem:[#allocation2 + $0x8] sm:$0xff] %vm38_vm0, %v310_v40 }
 0x425   :  { %409 = shalt.err (!%p406_p4)
}
 0x426   :  { %s423_s8 = smov 128   ;;  %s424_s11 = smov 8  }
 0x427   :  { %324 = dma.vmem_to_hbm [thread:$0]  %s319_s10, 256, %s550_s9, [#allocation3], %s423_s8, %s423_s8, %s424_s11  }
 0x428   :  { %418 = dma.done.wait [#allocation3], 256  }
 0x429   :  { %419 = vsyncadd [#allocation3], 4294967040 }
 0x42a   :  { %328 = vsyncpa [#allocation3], 1 }

</bundles_post_ra>
